<compile_context>
chip_gen: v6e
topology: v6e:2x2x1
jax: 0.10.0
libtpu: 0.0.40
codegen_flags: <defaults>
</compile_context>

<pallas_src>
import functools

import jax
import jax.numpy as jnp
from jax.experimental import pallas as pl
from jax.experimental.pallas import tpu as pltpu

BN_EPS = 1e-5
LEAKY_SLOPE = 0.2
LANES = 128


def _pack_params(entries, dtype=jnp.bfloat16):
    """Pack (name, 2-D array with <=128 cols) pairs into one (P, 128) slab.

    Multi-row entries (matmul weights) start on a packed-sublane-tile boundary;
    1-row vectors (biases / BN affine params) are packed contiguously (static
    in-kernel row slices need no alignment).  Returns (slab, meta) with
    meta[name] = (row_offset, rows, cols) as plain Python ints.
    """
    align = 8 * (4 // jnp.dtype(dtype).itemsize)   # 16 rows for bf16, 8 for f32
    placed, off = [], 0
    for name, a in entries:
        a = jnp.asarray(a, jnp.float32)
        r, c = a.shape
        if r > 1:
            off += (-off) % align
        placed.append((name, a, off, r, c))
        off += r
    total = off + (-off) % 8
    slab = jnp.zeros((total, LANES), jnp.float32)
    meta = {}
    for name, a, o, r, c in placed:
        slab = slab.at[o:o + r, :c].set(a)
        meta[name] = (o, r, c)
    return slab.astype(dtype), meta


def cvae_kernel(seq_len, vec_len, h4, meta, in_ref, p_ref, out_ref):
    bs = in_ref.shape[0]

    def param(name):
        off, r, c = meta[name]
        return p_ref[off:off + r, 0:c]          # static sub-slab view (bf16)

    def param_f32(name):
        return param(name).astype(jnp.float32)

    # Hoisted sequence-edge masks (BS, 1), shared by all five convs.
    s_idx = jax.lax.broadcasted_iota(jnp.int32, (bs, 1), 0) % seq_len
    is_first = s_idx == 0
    is_last = s_idx == seq_len - 1

    def conv1d(h, w_name, b_name=None):
        """kernel-3 / pad-1 conv along seq; 3 taps fused into one bf16 matmul.

        Row shifts are XLU sublane rolls; the wrap-around / cross-batch rows
        are exactly the seq-edge rows, re-zeroed by is_first / is_last.
        """
        h_prev = jnp.where(is_first, 0.0, pltpu.roll(h, shift=1, axis=0))
        h_next = jnp.where(is_last, 0.0, pltpu.roll(h, shift=bs - 1, axis=0))
        h_cat = jnp.concatenate([h_prev, h, h_next], axis=1)       # (BS, 3*Cin)
        y = jnp.dot(h_cat.astype(jnp.bfloat16), param(w_name),
                    preferred_element_type=jnp.float32)
        if b_name is not None:
            y = y + param_f32(b_name)
        return y

    def batchnorm(h, g_name, b_name):
        # One-pass biased batch stats (training-mode BatchNorm2d), in f32.
        inv_n = 1.0 / h.shape[0]
        mu = jnp.sum(h, axis=0, keepdims=True) * inv_n
        ex2 = jnp.sum(h * h, axis=0, keepdims=True) * inv_n
        var = jnp.maximum(ex2 - mu * mu, 0.0)
        a = param_f32(g_name) * jax.lax.rsqrt(var + BN_EPS)
        b = param_f32(b_name) - mu * a
        return h * a + b

    def leaky_relu(h):
        return jnp.maximum(h, LEAKY_SLOPE * h)

    # ---- unpack the single lane-dense input slab [x | eps | pad] ------------
    x = in_ref[:, 0:vec_len]
    eps = in_ref[:, vec_len:vec_len + h4]

    # ---- encoder: 3 x (conv1d -> batchnorm -> leaky_relu) -------------------
    # (conv biases omitted: a per-channel constant is exactly cancelled by BN)
    h = leaky_relu(batchnorm(conv1d(x, "w1"), "g1", "be1"))
    h = leaky_relu(batchnorm(conv1d(h, "w2"), "g2", "be2"))
    h = leaky_relu(batchnorm(conv1d(h, "w3"), "g3", "be3"))

    # ---- latent heads (mean | log_var fused into one matmul) ----------------
    ml = jnp.dot(h.astype(jnp.bfloat16), param("wml"),
                 preferred_element_type=jnp.float32) + param_f32("bml")
    mean = ml[:, :h4]
    logv = ml[:, h4:]
    z = mean + eps * jnp.exp(logv * 0.5)

    # ---- decoder: deconv1 -> BN -> leakyReLU; deconv2 + FC fused into "wdf" -
    d = leaky_relu(batchnorm(conv1d(z, "wd1"), "g4", "be4"))
    logits = conv1d(d, "wdf", "bdf")
    sig = jax.nn.sigmoid(logits)

    # ---- single lane-dense output slab: [mean | log_var | sigmoid | 0 pad] --
    parts = [ml, sig]
    pad_w = out_ref.shape[1] - (2 * h4 + vec_len)
    if pad_w:
        parts.append(jnp.zeros((bs, pad_w), jnp.float32))
    out_ref[...] = jnp.concatenate(parts, axis=1)


def init_params(key, vec_len, hidden):
    """Deterministic synthetic params in PyTorch layouts, fused + packed (bf16)."""
    H, H2, H4 = hidden, hidden // 2, hidden // 4
    ks = jax.random.split(key, 16)

    def nrm(k, shape, scale=0.1):
        return (scale * jax.random.normal(k, shape)).astype(jnp.float32)

    # torch layouts (conv biases b1/b2/b3/bd1 are unused: BN cancels them)
    conv1_w = nrm(ks[0], (H, vec_len, 3, 3))
    conv2_w = nrm(ks[2], (H2, H, 3, 3))
    conv3_w = nrm(ks[4], (H4, H2, 3, 3))
    mean_w = nrm(ks[6], (H4, H4));        mean_b = nrm(ks[7], (H4,))
    logv_w = nrm(ks[8], (H4, H4));        logv_b = nrm(ks[9], (H4,))
    dcv1_w = nrm(ks[10], (H4, H2, 3, 3))
    dcv2_w = nrm(ks[12], (H2, H, 3, 3));  dcv2_b = nrm(ks[13], (H,))
    fc_w = nrm(ks[14], (vec_len, H));     fc_b = nrm(ks[15], (vec_len,))

    def conv_to_k(w):
        # Conv2d (Cout,Cin,3,3): middle kw column -> (3,Cin,Cout) -> (3*Cin,Cout)
        k = jnp.transpose(w[:, :, :, 1], (2, 1, 0))
        return k.reshape(3 * k.shape[1], k.shape[2])

    def deconv_to_k(w):
        # ConvTranspose2d (Cin,Cout,3,3): flip kh, middle kw -> (3*Cin,Cout)
        k = jnp.transpose(w[:, :, ::-1, 1], (2, 0, 1))
        return k.reshape(3 * k.shape[1], k.shape[2])

    # Fuse last ConvTranspose with the time-distributed Linear (no nonlinearity
    # in between):  Wdf = Wd2 @ WfT  (3*H2, V),  bdf = bd2 @ WfT + bf  (V,)
    wd2_k = deconv_to_k(dcv2_w)          # (3*H2, H)
    wf_t = fc_w.T                        # (H, V)
    wdf = wd2_k @ wf_t                   # (3*H2, V)
    bdf = dcv2_b @ wf_t + fc_b           # (V,)

    row = lambda b: b.reshape(1, -1)
    ones = lambda c: jnp.ones((1, c), jnp.float32)
    zeros = lambda c: jnp.zeros((1, c), jnp.float32)

    entries = [
        ("w1", conv_to_k(conv1_w)),
        ("w2", conv_to_k(conv2_w)),
        ("w3", conv_to_k(conv3_w)),
        ("wml", jnp.concatenate([mean_w.T, logv_w.T], axis=1)),   # (H4, 2*H4)
        ("wd1", deconv_to_k(dcv1_w)),
        ("wdf", wdf),
        ("g1", ones(H)), ("be1", zeros(H)),
        ("g2", ones(H2)), ("be2", zeros(H2)),
        ("g3", ones(H4)), ("be3", zeros(H4)),
        ("bml", row(jnp.concatenate([mean_b, logv_b]))),
        ("g4", ones(H2)), ("be4", zeros(H2)),
        ("bdf", row(bdf)),
    ]
    return _pack_params(entries, dtype=jnp.bfloat16)


def cvae_pallas(x, eps, slab, meta):
    """x: (B, S, vec_len) f32, eps: (B, S, hidden//4) f32 -> (fc_out, mean, log_var)."""
    B, S, V = x.shape
    H4 = eps.shape[-1]
    H, H2 = 4 * H4, 2 * H4
    BS = B * S
    out_w = pl.cdiv(V + 2 * H4, LANES) * LANES

    # Single lane-dense input slab [x | eps | pad] -> one DMA instead of two.
    in_slab = jnp.zeros((BS, LANES), jnp.float32)
    in_slab = in_slab.at[:, :V].set(x.reshape(BS, V).astype(jnp.float32))
    in_slab = in_slab.at[:, V:V + H4].set(eps.reshape(BS, H4).astype(jnp.float32))

    # Advisory cost estimate (matmul flops, exp/sigmoid/rsqrt, slab DMAs).
    flops = 2 * BS * (3 * V * H + 3 * H * H2 + 3 * H2 * H4
                      + H4 * 2 * H4 + 3 * H4 * H2 + 3 * H2 * V)
    transc = BS * (H4 + V) + (H + 2 * H2 + H4)
    bytes_accessed = (2 * BS * LANES * 4
                      + int(slab.size) * int(jnp.dtype(slab.dtype).itemsize))

    vmem = pl.BlockSpec(memory_space=pltpu.MemorySpace.VMEM)
    out = pl.pallas_call(
        functools.partial(cvae_kernel, S, V, H4, meta),
        out_shape=jax.ShapeDtypeStruct((BS, out_w), jnp.float32),
        in_specs=[vmem, vmem],
        out_specs=vmem,
        cost_estimate=pl.CostEstimate(flops=int(flops),
                                      transcendentals=int(transc),
                                      bytes_accessed=int(bytes_accessed)),
    )(in_slab, slab)

    mean = out[:, :H4].reshape(B, S, H4)
    log_var = out[:, H4:2 * H4].reshape(B, S, H4)
    fc_out = out[:, 2 * H4:2 * H4 + V].reshape(B, S, V)
    return fc_out, mean, log_var


if __name__ == "__main__":
    B, SEQ_LEN, VEC_LEN, HIDDEN = 2, 16, 4, 32
    key = jax.random.PRNGKey(0)
    kx, keps, kp = jax.random.split(key, 3)

    x = jax.random.normal(kx, (B, SEQ_LEN, VEC_LEN), dtype=jnp.float32)
    slab, meta = init_params(kp, VEC_LEN, HIDDEN)
    # TODO(synk): torch.randn_like's RNG stream is not reproducible in JAX;
    # the reparameterization noise is supplied as an explicit kernel input.
    eps = jax.random.normal(keps, (B, SEQ_LEN, HIDDEN // 4), dtype=jnp.float32)

    fc_out, mean, log_var = cvae_pallas(x, eps, slab, meta)
    jax.block_until_ready((fc_out, mean, log_var))

    assert fc_out.shape == (B, SEQ_LEN, VEC_LEN)
    assert mean.shape == (B, SEQ_LEN, HIDDEN // 4)
    assert log_var.shape == (B, SEQ_LEN, HIDDEN // 4)
    assert bool(jnp.all(jnp.isfinite(fc_out)))
    assert bool(jnp.all((fc_out >= 0.0) & (fc_out <= 1.0)))
    print("KERNEL_OK")
</pallas_src>

<mosaic_0001>
module attributes {stable_mosaic.version = 11 : i64} {
  func.func @cvae_kernel(%arg0: memref<32x128xf32, #tpu.memory_space<vmem>>, %arg1: memref<272x128xbf16, #tpu.memory_space<vmem>>, %arg2: memref<32x128xf32, #tpu.memory_space<vmem>>) attributes {dimension_semantics = [], scalar_prefetch = 0 : i64, scratch_operands = 0 : i64, tpu.core_type = #tpu.core_type<tc>} {
    %0 = tpu.iota {dimensions = array<i32: 0>} : vector<32x1xi32>
    %c16_i32 = arith.constant 16 : i32
    %c0_i32 = arith.constant 0 : i32
    %1 = arith.cmpi eq, %c16_i32, %c0_i32 : i32
    %c1_i32 = arith.constant 1 : i32
    %2 = arith.select %1, %c1_i32, %c16_i32 : i32
    %3 = vector.broadcast %2 : i32 to vector<32x1xi32>
    %4 = arith.remsi %0, %3 : vector<32x1xi32>
    %c0_i32_0 = arith.constant 0 : i32
    %5 = vector.broadcast %c0_i32_0 : i32 to vector<32x1xi32>
    %6 = arith.cmpi ne, %4, %5 : vector<32x1xi32>
    %c0_i32_1 = arith.constant 0 : i32
    %7 = vector.broadcast %c0_i32_1 : i32 to vector<32x1xi32>
    %8 = arith.cmpi slt, %4, %7 : vector<32x1xi32>
    %c0_i32_2 = arith.constant 0 : i32
    %9 = arith.cmpi slt, %2, %c0_i32_2 : i32
    %10 = vector.broadcast %9 : i1 to vector<32x1xi1>
    %11 = vector.broadcast %10 : vector<32x1xi1> to vector<32x1xi1>
    %12 = arith.xori %8, %11 : vector<32x1xi1>
    %13 = arith.andi %12, %6 : vector<32x1xi1>
    %14 = vector.broadcast %2 : i32 to vector<32x1xi32>
    %15 = arith.addi %4, %14 : vector<32x1xi32>
    %16 = arith.select %13, %15, %4 : vector<32x1xi1>, vector<32x1xi32>
    %c0_i32_3 = arith.constant 0 : i32
    %17 = vector.broadcast %c0_i32_3 : i32 to vector<32x1xi32>
    %18 = arith.cmpi eq, %16, %17 : vector<32x1xi32>
    %c15_i32 = arith.constant 15 : i32
    %19 = vector.broadcast %c15_i32 : i32 to vector<32x1xi32>
    %20 = arith.cmpi eq, %16, %19 : vector<32x1xi32>
    %c0 = arith.constant 0 : index
    %c0_4 = arith.constant 0 : index
    %21 = vector.load %arg0[%c0, %c0_4] : memref<32x128xf32, #tpu.memory_space<vmem>>, vector<32x4xf32>
    %c0_5 = arith.constant 0 : index
    %c4 = arith.constant 4 : index
    %22 = vector.load %arg0[%c0_5, %c4] : memref<32x128xf32, #tpu.memory_space<vmem>>, vector<32x8xf32>
    %c1_i32_6 = arith.constant 1 : i32
    %23 = tpu.dynamic_rotate %21 by %c1_i32_6 dim 0 : vector<32x4xf32>, i32 -> vector<32x4xf32>
    %cst = arith.constant 0.000000e+00 : f32
    %24 = vector.shape_cast %18 : vector<32x1xi1> to vector<32x1xi1>
    %25 = vector.broadcast %24 : vector<32x1xi1> to vector<32x4xi1>
    %26 = vector.broadcast %cst : f32 to vector<32x4xf32>
    %27 = arith.select %25, %26, %23 : vector<32x4xi1>, vector<32x4xf32>
    %c31_i32 = arith.constant 31 : i32
    %28 = tpu.dynamic_rotate %21 by %c31_i32 dim 0 : vector<32x4xf32>, i32 -> vector<32x4xf32>
    %cst_7 = arith.constant 0.000000e+00 : f32
    %29 = vector.shape_cast %20 : vector<32x1xi1> to vector<32x1xi1>
    %30 = vector.broadcast %29 : vector<32x1xi1> to vector<32x4xi1>
    %31 = vector.broadcast %cst_7 : f32 to vector<32x4xf32>
    %32 = arith.select %30, %31, %28 : vector<32x4xi1>, vector<32x4xf32>
    %33 = tpu.concatenate %27, %21, %32 in 1 : vector<32x4xf32>, vector<32x4xf32>, vector<32x4xf32> -> vector<32x12xf32>
    %34 = arith.truncf %33 : vector<32x12xf32> to vector<32x12xbf16>
    %c0_8 = arith.constant 0 : index
    %c0_9 = arith.constant 0 : index
    %35 = vector.load %arg1[%c0_8, %c0_9] : memref<272x128xbf16, #tpu.memory_space<vmem>>, vector<12x32xbf16>
    %cst_10 = arith.constant dense<0.000000e+00> : vector<32x32xf32>
    %36 = tpu.matmul %34, %35, %cst_10 {dimension_numbers = #tpu.dot_dimension_numbers<[1], [0], [0], [1], [0, 0, 1, 1], [], []>} : vector<32x12xbf16>, vector<12x32xbf16>, vector<32x32xf32> -> vector<32x32xf32>
    %cst_11 = arith.constant dense<0.000000e+00> : vector<32xf32>
    %37 = vector.multi_reduction <add>, %36, %cst_11 [0] : vector<32x32xf32> to vector<32xf32>
    %38 = vector.shape_cast %37 : vector<32xf32> to vector<1x32xf32>
    %cst_12 = arith.constant 3.125000e-02 : f32
    %39 = vector.broadcast %cst_12 : f32 to vector<1x32xf32>
    %40 = arith.mulf %38, %39 : vector<1x32xf32>
    %41 = arith.mulf %36, %36 : vector<32x32xf32>
    %cst_13 = arith.constant dense<0.000000e+00> : vector<32xf32>
    %42 = vector.multi_reduction <add>, %41, %cst_13 [0] : vector<32x32xf32> to vector<32xf32>
    %43 = vector.shape_cast %42 : vector<32xf32> to vector<1x32xf32>
    %cst_14 = arith.constant 3.125000e-02 : f32
    %44 = vector.broadcast %cst_14 : f32 to vector<1x32xf32>
    %45 = arith.mulf %43, %44 : vector<1x32xf32>
    %46 = arith.mulf %40, %40 : vector<1x32xf32>
    %47 = arith.subf %45, %46 : vector<1x32xf32>
    %cst_15 = arith.constant 0.000000e+00 : f32
    %48 = vector.broadcast %cst_15 : f32 to vector<1x32xf32>
    %49 = arith.maximumf %47, %48 : vector<1x32xf32>
    %c256 = arith.constant 256 : index
    %c0_16 = arith.constant 0 : index
    %50 = vector.load %arg1[%c256, %c0_16] : memref<272x128xbf16, #tpu.memory_space<vmem>>, vector<1x32xbf16>
    %51 = arith.extf %50 : vector<1x32xbf16> to vector<1x32xf32>
    %cst_17 = arith.constant 9.99999974E-6 : f32
    %52 = vector.broadcast %cst_17 : f32 to vector<1x32xf32>
    %53 = arith.addf %49, %52 : vector<1x32xf32>
    %54 = math.rsqrt %53 : vector<1x32xf32>
    %55 = arith.mulf %51, %54 : vector<1x32xf32>
    %c257 = arith.constant 257 : index
    %c0_18 = arith.constant 0 : index
    %56 = vector.load %arg1[%c257, %c0_18] : memref<272x128xbf16, #tpu.memory_space<vmem>>, vector<1x32xbf16>
    %57 = arith.extf %56 : vector<1x32xbf16> to vector<1x32xf32>
    %58 = arith.mulf %40, %55 : vector<1x32xf32>
    %59 = arith.subf %57, %58 : vector<1x32xf32>
    %60 = vector.broadcast %55 : vector<1x32xf32> to vector<32x32xf32>
    %61 = arith.mulf %36, %60 : vector<32x32xf32>
    %62 = vector.broadcast %59 : vector<1x32xf32> to vector<32x32xf32>
    %63 = arith.addf %61, %62 : vector<32x32xf32>
    %cst_19 = arith.constant 2.000000e-01 : f32
    %64 = vector.broadcast %cst_19 : f32 to vector<32x32xf32>
    %65 = arith.mulf %64, %63 : vector<32x32xf32>
    %66 = arith.maximumf %63, %65 : vector<32x32xf32>
    %c1_i32_20 = arith.constant 1 : i32
    %67 = tpu.dynamic_rotate %66 by %c1_i32_20 dim 0 : vector<32x32xf32>, i32 -> vector<32x32xf32>
    %cst_21 = arith.constant 0.000000e+00 : f32
    %68 = vector.shape_cast %18 : vector<32x1xi1> to vector<32x1xi1>
    %69 = vector.broadcast %68 : vector<32x1xi1> to vector<32x32xi1>
    %70 = vector.broadcast %cst_21 : f32 to vector<32x32xf32>
    %71 = arith.select %69, %70, %67 : vector<32x32xi1>, vector<32x32xf32>
    %c31_i32_22 = arith.constant 31 : i32
    %72 = tpu.dynamic_rotate %66 by %c31_i32_22 dim 0 : vector<32x32xf32>, i32 -> vector<32x32xf32>
    %cst_23 = arith.constant 0.000000e+00 : f32
    %73 = vector.shape_cast %20 : vector<32x1xi1> to vector<32x1xi1>
    %74 = vector.broadcast %73 : vector<32x1xi1> to vector<32x32xi1>
    %75 = vector.broadcast %cst_23 : f32 to vector<32x32xf32>
    %76 = arith.select %74, %75, %72 : vector<32x32xi1>, vector<32x32xf32>
    %77 = tpu.concatenate %71, %66, %76 in 1 : vector<32x32xf32>, vector<32x32xf32>, vector<32x32xf32> -> vector<32x96xf32>
    %78 = arith.truncf %77 : vector<32x96xf32> to vector<32x96xbf16>
    %c16 = arith.constant 16 : index
    %c0_24 = arith.constant 0 : index
    %79 = vector.load %arg1[%c16, %c0_24] : memref<272x128xbf16, #tpu.memory_space<vmem>>, vector<96x16xbf16>
    %cst_25 = arith.constant dense<0.000000e+00> : vector<32x16xf32>
    %80 = tpu.matmul %78, %79, %cst_25 {dimension_numbers = #tpu.dot_dimension_numbers<[1], [0], [0], [1], [0, 0, 1, 1], [], []>} : vector<32x96xbf16>, vector<96x16xbf16>, vector<32x16xf32> -> vector<32x16xf32>
    %cst_26 = arith.constant dense<0.000000e+00> : vector<16xf32>
    %81 = vector.multi_reduction <add>, %80, %cst_26 [0] : vector<32x16xf32> to vector<16xf32>
    %82 = vector.shape_cast %81 : vector<16xf32> to vector<1x16xf32>
    %cst_27 = arith.constant 3.125000e-02 : f32
    %83 = vector.broadcast %cst_27 : f32 to vector<1x16xf32>
    %84 = arith.mulf %82, %83 : vector<1x16xf32>
    %85 = arith.mulf %80, %80 : vector<32x16xf32>
    %cst_28 = arith.constant dense<0.000000e+00> : vector<16xf32>
    %86 = vector.multi_reduction <add>, %85, %cst_28 [0] : vector<32x16xf32> to vector<16xf32>
    %87 = vector.shape_cast %86 : vector<16xf32> to vector<1x16xf32>
    %cst_29 = arith.constant 3.125000e-02 : f32
    %88 = vector.broadcast %cst_29 : f32 to vector<1x16xf32>
    %89 = arith.mulf %87, %88 : vector<1x16xf32>
    %90 = arith.mulf %84, %84 : vector<1x16xf32>
    %91 = arith.subf %89, %90 : vector<1x16xf32>
    %cst_30 = arith.constant 0.000000e+00 : f32
    %92 = vector.broadcast %cst_30 : f32 to vector<1x16xf32>
    %93 = arith.maximumf %91, %92 : vector<1x16xf32>
    %c258 = arith.constant 258 : index
    %c0_31 = arith.constant 0 : index
    %94 = vector.load %arg1[%c258, %c0_31] : memref<272x128xbf16, #tpu.memory_space<vmem>>, vector<1x16xbf16>
    %95 = arith.extf %94 : vector<1x16xbf16> to vector<1x16xf32>
    %cst_32 = arith.constant 9.99999974E-6 : f32
    %96 = vector.broadcast %cst_32 : f32 to vector<1x16xf32>
    %97 = arith.addf %93, %96 : vector<1x16xf32>
    %98 = math.rsqrt %97 : vector<1x16xf32>
    %99 = arith.mulf %95, %98 : vector<1x16xf32>
    %c259 = arith.constant 259 : index
    %c0_33 = arith.constant 0 : index
    %100 = vector.load %arg1[%c259, %c0_33] : memref<272x128xbf16, #tpu.memory_space<vmem>>, vector<1x16xbf16>
    %101 = arith.extf %100 : vector<1x16xbf16> to vector<1x16xf32>
    %102 = arith.mulf %84, %99 : vector<1x16xf32>
    %103 = arith.subf %101, %102 : vector<1x16xf32>
    %104 = vector.broadcast %99 : vector<1x16xf32> to vector<32x16xf32>
    %105 = arith.mulf %80, %104 : vector<32x16xf32>
    %106 = vector.broadcast %103 : vector<1x16xf32> to vector<32x16xf32>
    %107 = arith.addf %105, %106 : vector<32x16xf32>
    %cst_34 = arith.constant 2.000000e-01 : f32
    %108 = vector.broadcast %cst_34 : f32 to vector<32x16xf32>
    %109 = arith.mulf %108, %107 : vector<32x16xf32>
    %110 = arith.maximumf %107, %109 : vector<32x16xf32>
    %c1_i32_35 = arith.constant 1 : i32
    %111 = tpu.dynamic_rotate %110 by %c1_i32_35 dim 0 : vector<32x16xf32>, i32 -> vector<32x16xf32>
    %cst_36 = arith.constant 0.000000e+00 : f32
    %112 = vector.shape_cast %18 : vector<32x1xi1> to vector<32x1xi1>
    %113 = vector.broadcast %112 : vector<32x1xi1> to vector<32x16xi1>
    %114 = vector.broadcast %cst_36 : f32 to vector<32x16xf32>
    %115 = arith.select %113, %114, %111 : vector<32x16xi1>, vector<32x16xf32>
    %c31_i32_37 = arith.constant 31 : i32
    %116 = tpu.dynamic_rotate %110 by %c31_i32_37 dim 0 : vector<32x16xf32>, i32 -> vector<32x16xf32>
    %cst_38 = arith.constant 0.000000e+00 : f32
    %117 = vector.shape_cast %20 : vector<32x1xi1> to vector<32x1xi1>
    %118 = vector.broadcast %117 : vector<32x1xi1> to vector<32x16xi1>
    %119 = vector.broadcast %cst_38 : f32 to vector<32x16xf32>
    %120 = arith.select %118, %119, %116 : vector<32x16xi1>, vector<32x16xf32>
    %121 = tpu.concatenate %115, %110, %120 in 1 : vector<32x16xf32>, vector<32x16xf32>, vector<32x16xf32> -> vector<32x48xf32>
    %122 = arith.truncf %121 : vector<32x48xf32> to vector<32x48xbf16>
    %c112 = arith.constant 112 : index
    %c0_39 = arith.constant 0 : index
    %123 = vector.load %arg1[%c112, %c0_39] : memref<272x128xbf16, #tpu.memory_space<vmem>>, vector<48x8xbf16>
    %cst_40 = arith.constant dense<0.000000e+00> : vector<32x8xf32>
    %124 = tpu.matmul %122, %123, %cst_40 {dimension_numbers = #tpu.dot_dimension_numbers<[1], [0], [0], [1], [0, 0, 1, 1], [], []>} : vector<32x48xbf16>, vector<48x8xbf16>, vector<32x8xf32> -> vector<32x8xf32>
    %cst_41 = arith.constant dense<0.000000e+00> : vector<8xf32>
    %125 = vector.multi_reduction <add>, %124, %cst_41 [0] : vector<32x8xf32> to vector<8xf32>
    %126 = vector.shape_cast %125 : vector<8xf32> to vector<1x8xf32>
    %cst_42 = arith.constant 3.125000e-02 : f32
    %127 = vector.broadcast %cst_42 : f32 to vector<1x8xf32>
    %128 = arith.mulf %126, %127 : vector<1x8xf32>
    %129 = arith.mulf %124, %124 : vector<32x8xf32>
    %cst_43 = arith.constant dense<0.000000e+00> : vector<8xf32>
    %130 = vector.multi_reduction <add>, %129, %cst_43 [0] : vector<32x8xf32> to vector<8xf32>
    %131 = vector.shape_cast %130 : vector<8xf32> to vector<1x8xf32>
    %cst_44 = arith.constant 3.125000e-02 : f32
    %132 = vector.broadcast %cst_44 : f32 to vector<1x8xf32>
    %133 = arith.mulf %131, %132 : vector<1x8xf32>
    %134 = arith.mulf %128, %128 : vector<1x8xf32>
    %135 = arith.subf %133, %134 : vector<1x8xf32>
    %cst_45 = arith.constant 0.000000e+00 : f32
    %136 = vector.broadcast %cst_45 : f32 to vector<1x8xf32>
    %137 = arith.maximumf %135, %136 : vector<1x8xf32>
    %c260 = arith.constant 260 : index
    %c0_46 = arith.constant 0 : index
    %138 = vector.load %arg1[%c260, %c0_46] : memref<272x128xbf16, #tpu.memory_space<vmem>>, vector<1x8xbf16>
    %139 = arith.extf %138 : vector<1x8xbf16> to vector<1x8xf32>
    %cst_47 = arith.constant 9.99999974E-6 : f32
    %140 = vector.broadcast %cst_47 : f32 to vector<1x8xf32>
    %141 = arith.addf %137, %140 : vector<1x8xf32>
    %142 = math.rsqrt %141 : vector<1x8xf32>
    %143 = arith.mulf %139, %142 : vector<1x8xf32>
    %c261 = arith.constant 261 : index
    %c0_48 = arith.constant 0 : index
    %144 = vector.load %arg1[%c261, %c0_48] : memref<272x128xbf16, #tpu.memory_space<vmem>>, vector<1x8xbf16>
    %145 = arith.extf %144 : vector<1x8xbf16> to vector<1x8xf32>
    %146 = arith.mulf %128, %143 : vector<1x8xf32>
    %147 = arith.subf %145, %146 : vector<1x8xf32>
    %148 = vector.broadcast %143 : vector<1x8xf32> to vector<32x8xf32>
    %149 = arith.mulf %124, %148 : vector<32x8xf32>
    %150 = vector.broadcast %147 : vector<1x8xf32> to vector<32x8xf32>
    %151 = arith.addf %149, %150 : vector<32x8xf32>
    %cst_49 = arith.constant 2.000000e-01 : f32
    %152 = vector.broadcast %cst_49 : f32 to vector<32x8xf32>
    %153 = arith.mulf %152, %151 : vector<32x8xf32>
    %154 = arith.maximumf %151, %153 : vector<32x8xf32>
    %155 = arith.truncf %154 : vector<32x8xf32> to vector<32x8xbf16>
    %c160 = arith.constant 160 : index
    %c0_50 = arith.constant 0 : index
    %156 = vector.load %arg1[%c160, %c0_50] : memref<272x128xbf16, #tpu.memory_space<vmem>>, vector<8x16xbf16>
    %cst_51 = arith.constant dense<0.000000e+00> : vector<32x16xf32>
    %157 = tpu.matmul %155, %156, %cst_51 {dimension_numbers = #tpu.dot_dimension_numbers<[1], [0], [0], [1], [0, 0, 1, 1], [], []>} : vector<32x8xbf16>, vector<8x16xbf16>, vector<32x16xf32> -> vector<32x16xf32>
    %c262 = arith.constant 262 : index
    %c0_52 = arith.constant 0 : index
    %158 = vector.load %arg1[%c262, %c0_52] : memref<272x128xbf16, #tpu.memory_space<vmem>>, vector<1x16xbf16>
    %159 = arith.extf %158 : vector<1x16xbf16> to vector<1x16xf32>
    %160 = vector.broadcast %159 : vector<1x16xf32> to vector<32x16xf32>
    %161 = arith.addf %157, %160 : vector<32x16xf32>
    %162 = vector.extract_strided_slice %161 {offsets = [0, 0], sizes = [32, 8], strides = [1, 1]} : vector<32x16xf32> to vector<32x8xf32>
    %163 = vector.extract_strided_slice %161 {offsets = [0, 8], sizes = [32, 8], strides = [1, 1]} : vector<32x16xf32> to vector<32x8xf32>
    %cst_53 = arith.constant 5.000000e-01 : f32
    %164 = vector.broadcast %cst_53 : f32 to vector<32x8xf32>
    %165 = arith.mulf %163, %164 : vector<32x8xf32>
    %166 = math.exp %165 : vector<32x8xf32>
    %167 = arith.mulf %22, %166 : vector<32x8xf32>
    %168 = arith.addf %162, %167 : vector<32x8xf32>
    %c1_i32_54 = arith.constant 1 : i32
    %169 = tpu.dynamic_rotate %168 by %c1_i32_54 dim 0 : vector<32x8xf32>, i32 -> vector<32x8xf32>
    %cst_55 = arith.constant 0.000000e+00 : f32
    %170 = vector.shape_cast %18 : vector<32x1xi1> to vector<32x1xi1>
    %171 = vector.broadcast %170 : vector<32x1xi1> to vector<32x8xi1>
    %172 = vector.broadcast %cst_55 : f32 to vector<32x8xf32>
    %173 = arith.select %171, %172, %169 : vector<32x8xi1>, vector<32x8xf32>
    %c31_i32_56 = arith.constant 31 : i32
    %174 = tpu.dynamic_rotate %168 by %c31_i32_56 dim 0 : vector<32x8xf32>, i32 -> vector<32x8xf32>
    %cst_57 = arith.constant 0.000000e+00 : f32
    %175 = vector.shape_cast %20 : vector<32x1xi1> to vector<32x1xi1>
    %176 = vector.broadcast %175 : vector<32x1xi1> to vector<32x8xi1>
    %177 = vector.broadcast %cst_57 : f32 to vector<32x8xf32>
    %178 = arith.select %176, %177, %174 : vector<32x8xi1>, vector<32x8xf32>
    %179 = tpu.concatenate %173, %168, %178 in 1 : vector<32x8xf32>, vector<32x8xf32>, vector<32x8xf32> -> vector<32x24xf32>
    %180 = arith.truncf %179 : vector<32x24xf32> to vector<32x24xbf16>
    %c176 = arith.constant 176 : index
    %c0_58 = arith.constant 0 : index
    %181 = vector.load %arg1[%c176, %c0_58] : memref<272x128xbf16, #tpu.memory_space<vmem>>, vector<24x16xbf16>
    %cst_59 = arith.constant dense<0.000000e+00> : vector<32x16xf32>
    %182 = tpu.matmul %180, %181, %cst_59 {dimension_numbers = #tpu.dot_dimension_numbers<[1], [0], [0], [1], [0, 0, 1, 1], [], []>} : vector<32x24xbf16>, vector<24x16xbf16>, vector<32x16xf32> -> vector<32x16xf32>
    %cst_60 = arith.constant dense<0.000000e+00> : vector<16xf32>
    %183 = vector.multi_reduction <add>, %182, %cst_60 [0] : vector<32x16xf32> to vector<16xf32>
    %184 = vector.shape_cast %183 : vector<16xf32> to vector<1x16xf32>
    %cst_61 = arith.constant 3.125000e-02 : f32
    %185 = vector.broadcast %cst_61 : f32 to vector<1x16xf32>
    %186 = arith.mulf %184, %185 : vector<1x16xf32>
    %187 = arith.mulf %182, %182 : vector<32x16xf32>
    %cst_62 = arith.constant dense<0.000000e+00> : vector<16xf32>
    %188 = vector.multi_reduction <add>, %187, %cst_62 [0] : vector<32x16xf32> to vector<16xf32>
    %189 = vector.shape_cast %188 : vector<16xf32> to vector<1x16xf32>
    %cst_63 = arith.constant 3.125000e-02 : f32
    %190 = vector.broadcast %cst_63 : f32 to vector<1x16xf32>
    %191 = arith.mulf %189, %190 : vector<1x16xf32>
    %192 = arith.mulf %186, %186 : vector<1x16xf32>
    %193 = arith.subf %191, %192 : vector<1x16xf32>
    %cst_64 = arith.constant 0.000000e+00 : f32
    %194 = vector.broadcast %cst_64 : f32 to vector<1x16xf32>
    %195 = arith.maximumf %193, %194 : vector<1x16xf32>
    %c263 = arith.constant 263 : index
    %c0_65 = arith.constant 0 : index
    %196 = vector.load %arg1[%c263, %c0_65] : memref<272x128xbf16, #tpu.memory_space<vmem>>, vector<1x16xbf16>
    %197 = arith.extf %196 : vector<1x16xbf16> to vector<1x16xf32>
    %cst_66 = arith.constant 9.99999974E-6 : f32
    %198 = vector.broadcast %cst_66 : f32 to vector<1x16xf32>
    %199 = arith.addf %195, %198 : vector<1x16xf32>
    %200 = math.rsqrt %199 : vector<1x16xf32>
    %201 = arith.mulf %197, %200 : vector<1x16xf32>
    %c264 = arith.constant 264 : index
    %c0_67 = arith.constant 0 : index
    %202 = vector.load %arg1[%c264, %c0_67] : memref<272x128xbf16, #tpu.memory_space<vmem>>, vector<1x16xbf16>
    %203 = arith.extf %202 : vector<1x16xbf16> to vector<1x16xf32>
    %204 = arith.mulf %186, %201 : vector<1x16xf32>
    %205 = arith.subf %203, %204 : vector<1x16xf32>
    %206 = vector.broadcast %201 : vector<1x16xf32> to vector<32x16xf32>
    %207 = arith.mulf %182, %206 : vector<32x16xf32>
    %208 = vector.broadcast %205 : vector<1x16xf32> to vector<32x16xf32>
    %209 = arith.addf %207, %208 : vector<32x16xf32>
    %cst_68 = arith.constant 2.000000e-01 : f32
    %210 = vector.broadcast %cst_68 : f32 to vector<32x16xf32>
    %211 = arith.mulf %210, %209 : vector<32x16xf32>
    %212 = arith.maximumf %209, %211 : vector<32x16xf32>
    %c1_i32_69 = arith.constant 1 : i32
    %213 = tpu.dynamic_rotate %212 by %c1_i32_69 dim 0 : vector<32x16xf32>, i32 -> vector<32x16xf32>
    %cst_70 = arith.constant 0.000000e+00 : f32
    %214 = vector.shape_cast %18 : vector<32x1xi1> to vector<32x1xi1>
    %215 = vector.broadcast %214 : vector<32x1xi1> to vector<32x16xi1>
    %216 = vector.broadcast %cst_70 : f32 to vector<32x16xf32>
    %217 = arith.select %215, %216, %213 : vector<32x16xi1>, vector<32x16xf32>
    %c31_i32_71 = arith.constant 31 : i32
    %218 = tpu.dynamic_rotate %212 by %c31_i32_71 dim 0 : vector<32x16xf32>, i32 -> vector<32x16xf32>
    %cst_72 = arith.constant 0.000000e+00 : f32
    %219 = vector.shape_cast %20 : vector<32x1xi1> to vector<32x1xi1>
    %220 = vector.broadcast %219 : vector<32x1xi1> to vector<32x16xi1>
    %221 = vector.broadcast %cst_72 : f32 to vector<32x16xf32>
    %222 = arith.select %220, %221, %218 : vector<32x16xi1>, vector<32x16xf32>
    %223 = tpu.concatenate %217, %212, %222 in 1 : vector<32x16xf32>, vector<32x16xf32>, vector<32x16xf32> -> vector<32x48xf32>
    %224 = arith.truncf %223 : vector<32x48xf32> to vector<32x48xbf16>
    %c208 = arith.constant 208 : index
    %c0_73 = arith.constant 0 : index
    %225 = vector.load %arg1[%c208, %c0_73] : memref<272x128xbf16, #tpu.memory_space<vmem>>, vector<48x4xbf16>
    %cst_74 = arith.constant dense<0.000000e+00> : vector<32x4xf32>
    %226 = tpu.matmul %224, %225, %cst_74 {dimension_numbers = #tpu.dot_dimension_numbers<[1], [0], [0], [1], [0, 0, 1, 1], [], []>} : vector<32x48xbf16>, vector<48x4xbf16>, vector<32x4xf32> -> vector<32x4xf32>
    %c265 = arith.constant 265 : index
    %c0_75 = arith.constant 0 : index
    %227 = vector.load %arg1[%c265, %c0_75] : memref<272x128xbf16, #tpu.memory_space<vmem>>, vector<1x4xbf16>
    %228 = arith.extf %227 : vector<1x4xbf16> to vector<1x4xf32>
    %229 = vector.broadcast %228 : vector<1x4xf32> to vector<32x4xf32>
    %230 = arith.addf %226, %229 : vector<32x4xf32>
    %231 = arith.negf %230 : vector<32x4xf32>
    %232 = math.exp %231 : vector<32x4xf32>
    %cst_76 = arith.constant 1.000000e+00 : f32
    %233 = vector.broadcast %cst_76 : f32 to vector<32x4xf32>
    %234 = arith.addf %233, %232 : vector<32x4xf32>
    %235 = arith.divf %233, %234 : vector<32x4xf32>
    %cst_77 = arith.constant 0.000000e+00 : f32
    %236 = vector.broadcast %cst_77 : f32 to vector<32x108xf32>
    %237 = tpu.concatenate %161, %235, %236 in 1 : vector<32x16xf32>, vector<32x4xf32>, vector<32x108xf32> -> vector<32x128xf32>
    %c0_78 = arith.constant 0 : index
    %c0_79 = arith.constant 0 : index
    %238 = vector.load %arg2[%c0_78, %c0_79] : memref<32x128xf32, #tpu.memory_space<vmem>>, vector<32x128xf32>
    tpu.vector_store %arg2[%c0_78, %c0_79], %237 {strides = array<i32>} : memref<32x128xf32, #tpu.memory_space<vmem>>, vector<32x128xf32>,
    return
  }
}

</mosaic_0001>

<bundles_post_ra>
// kernel: tpu_custom_call.1
= control target key start
LH: loop header
LB: loop body
LE: loop exit
PB: predicated region body
PF: predicated region fallthrough
CT: control target
= control target key end

     0   :  { %7 = vsyncpa [#allocation3], 0  ;;  %s2053_s0 = inlined_call_operand.hbm [shape: f32[32,128], index: 0, kind: input, shape index: {}]   ;;  %s2054_s1 = inlined_call_operand.hbm [shape: bf16[272,128], index: 1, kind: input, shape index: {}]   ;;  %s2055_s2 = inlined_call_operand.hbm [shape: f32[32,128], index: 2, kind: output, shape index: {}]  }
   0x1   :  { %8 = vsyncpa [#allocation6], 0 }
   0x2   :  { %9 = vsyncpa [#allocation4], 0  ;;  %s1672_s9 = smov [#allocation2]  }
   0x3   :  { %s15_s10 = sshll.u32 %s1672_s9, 4  ;;  %s16_s10 = int_to_ptr.vmem [resolvable:$true] %s15_s10 }
   0x4   :  { %s1614_s11 = scalar_lea.vmem %s16_s10, 512  ;;  %p1619_p1 = scmp.lt.s32.totalorder %s16_s10, %s16_s10 }
   0x5   :  { %p1615_p0 = scmp.ne.s32.totalorder %s16_s10, %s1614_s11  ;;  %p1620_p2 = scmp.lt.s32.totalorder %s1614_s11, %s1614_s11 }
   0x7   :  { %p1621_p3 = por %p1620_p2, %p1619_p1 }
   0x9   :  { %p1622_p4 = pnand %p1621_p3, %p1615_p0 }
   0xb   :  { %1625 = shalt.err (!%p1622_p4)
}
   0xc   :  { %s1673_s12 = smov 128   ;;  %s1674_s13 = smov 8  }
   0xd   :  { %21 = dma.hbm_to_vmem [thread:$0]  %s2053_s0, 512, %s16_s10, [#allocation3], %s1673_s12, %s1673_s12, %s1674_s13  }
   0xe   :  { %s1675_s16 = smov [#allocation5]  }
   0xf   :  { %s27_s17 = sshll.u32 %s1675_s16, 4  ;;  %s28_s17 = int_to_ptr.vmem [resolvable:$true] %s27_s17 }
  0x10   :  { %s1634_s18 = scalar_lea.vmem %s28_s17, 2176  ;;  %p1639_p6 = scmp.lt.s32.totalorder %s28_s17, %s28_s17 }
  0x11   :  { %p1635_p5 = scmp.ne.s32.totalorder %s28_s17, %s1634_s18  ;;  %p1640_p7 = scmp.lt.s32.totalorder %s1634_s18, %s1634_s18 }
  0x13   :  { %p1641_p8 = por %p1640_p7, %p1639_p6 }
  0x15   :  { %p1642_p9 = pnand %p1641_p8, %p1635_p5 }
  0x17   :  { %1645 = shalt.err (!%p1642_p9)
}
  0x18   :  { %s1676_s19 = smov 64   ;;  %s1677_s20 = smov 4  }
  0x19   :  { %33 = dma.hbm_to_vmem [thread:$0]  %s2054_s1, 2176, %s28_s17, [#allocation6], %s1676_s19, %s1676_s19, %s1677_s20  }
  0x1a   :  { %1666 = dma.done.wait [#allocation3], 512  }
  0x1b   :  { %1667 = vsyncadd [#allocation3], 4294966784 }
  0x1c   :  { %1668 = dma.done.wait [#allocation6], 2176  }
  0x1d   :  { %1669 = vsyncadd [#allocation6], 4294965120  ;;  %v41_v0 = vlaneseq  ;;  %v1713_v6 = vld [vmem:[#allocation2] sm:$0xff]  ;;  %v1715_v7 = vld [vmem:[#allocation2 + $0x8] sm:$0xff]  ;;  %vm206_vm1 = vcmask 1045504   ;;  %vm180_vm6 = vcmask 31744  }
  0x1e   :  { %v1717_v8 = vld [vmem:[#allocation2 + $0x10] sm:$0xff]  ;;  %v1459_v9 = vpack.i.bf16 %v1715_v7, %v1713_v6  ;;  %v1722_v10 = vld [vmem:[#allocation2 + $0x18] sm:$0xff]  ;;  %v127_v12 = vrot.slane %v1713_v6, 1  ;;  %v128_v13 = vrot.slane %v1715_v7, 1  ;;  %v1559_v18 = vld [vmem:[#allocation5] sm:$0x3f]  }
  0x1f   :  { %v1709_v1 = vshrl.u32 %v41_v0, 7  ;;  %v129_v14 = vrot.slane %v1717_v8, 1  ;;  %v1464_v15 = vpack.i.bf16 %v1722_v10, %v1717_v8  ;;  %v130_v17 = vrot.slane %v1722_v10, 1  ;;  %1446 = vmatprep.subr.msk.bf16.mxu0 %vm206_vm1, %v1559_v18  ;;  %s1678_s0 = smov 32   ;;  %s1679_s1 = smov 16  }
  0x20   :  { %1460 = vrot.lane.b32.xlu0 %v1459_v9, %s1677_s20  ;;  %v208_v26 = vsel %vm206_vm1, %v1559_v18, 0  ;;  %v106_v28 = vrot.slane %v1713_v6, 7  ;;  %v109_v29 = vrot.slane %v1722_v10, 7  ;;  %v107_v32 = vrot.slane %v1715_v7, 7  ;;  %s1680_s23 = smov 124   ;;  %s1681_s24 = smov [#allocation7]  }
  0x21   :  { %v43_v2 = vadd.s32 8, %v1709_v1  ;;  %v45_v3 = vadd.s32 24, %v1709_v1  ;;  %vm131_vm0 = vcmp.lt.s32.totalorder %v1709_v1, 7  ;;  %1391 = vmatpush3.bf16.msra.mxu0 %v208_v26  ;;  %v44_v30 = vadd.s32 16, %v1709_v1  ;;  %s1318_s25 = sshll.u32 %s1681_s24, 4  ;;  %s1319_s25 = int_to_ptr.vmem [resolvable:$true] %s1318_s25 }
  0x22   :  { %v133_v19 = vsel %vm131_vm0, %v128_v13, %v129_v14  ;;  %v134_v20 = vsel %vm131_vm0, %v127_v12, %v128_v13  ;;  %v132_v22 = vsel %vm131_vm0, %v129_v14, %v130_v17  ;;  %v135_v23 = vsel %vm131_vm0, %v130_v17, %v127_v12  ;;  %s1646_s26 = scalar_lea.vmem %s1319_s25, 512  ;;  %p1651_p11 = scmp.lt.s32.totalorder %s1319_s25, %s1319_s25 }
  0x23   :  { %v57_v4 = vand.u32 15, %v43_v2  ;;  %v71_v5 = vand.u32 15, %v45_v3  ;;  %v50_v31 = vand.u32 15, %v1709_v1  ;;  %vm110_vm4 = vcmp.lt.s32.totalorder %v1709_v1, 1  ;;  %v1560_v2 = vld [vmem:[#allocation5 + $0x30] sm:$0xff]   ;;  %v1561_v3 = vld [vmem:[#allocation5 + $0x28] sm:$0xff]   ;;  %p1647_p10 = scmp.ne.s32.totalorder %s1319_s25, %s1646_s26  ;;  %p1652_p12 = scmp.lt.s32.totalorder %s1646_s26, %s1646_s26 }
  0x24   :  { %1465 = vrot.lane.b32.xlu0 %v1464_v15, %s1677_s20  ;;  %v64_v33 = vand.u32 15, %v44_v30  ;;  %v108_v34 = vrot.slane %v1717_v8, 7  ;;  %v114_v36 = vsel %vm110_vm4, %v109_v29, %v106_v28  ;;  %v113_v40 = vsel %vm110_vm4, %v106_v28, %v107_v32  ;;  %1396 = vmatprep.subr.bf16.mxu1 %v1560_v2 }
  0x25   :  { %vm1724_vm2 = vcmp.eq.s32.totalorder %v57_v4, 15  ;;  %vm1734_vm3 = vcmp.eq.s32.totalorder %v71_v5, 15  ;;  %vm1763_vm5 = vcmp.eq.s32.totalorder %v50_v31, 0  ;;  %vm185_vm8 = vcmask 64512   ;;  %1397 = vmatpush3.bf16.msra.mxu1 %v1560_v2  ;;  %v1562_v4 = vld [vmem:[#allocation5 + $0x20] sm:$0xff]   ;;  %v1563_v5 = vld [vmem:[#allocation5 + $0x18] sm:$0xff]   ;;  %p1653_p13 = por %p1652_p12, %p1651_p11 }
  0x26   :  { %v145_v21 = vsel %vm1724_vm2, 0.0, %v133_v19  ;;  %v147_v25 = vsel %vm1734_vm3, 0.0, %v135_v23  ;;  %v123_v41 = vsel %vm1763_vm5, 0.0, %v114_v36  ;;  %vm1773_vm7 = vcmp.eq.s32.totalorder %v64_v33, 0  ;;  %1398 = vmatprep.subr.bf16.mxu1 %v1561_v3  ;;  %v1564_v2 = vld [vmem:[#allocation5 + $0x10] sm:$0xff]  }
  0x27   :  { %v1469_v24 = vpack.i.bf16 %v145_v21, %v134_v20  ;;  %v1474_v27 = vpack.i.bf16 %v147_v25, %v132_v22  ;;  %v112_v43 = vsel %vm110_vm4, %v107_v32, %v108_v34  ;;  %v111_v52 = vsel %vm110_vm4, %v108_v34, %v109_v29  ;;  %p1654_p0 = pnand %p1653_p13, %p1647_p10 }
  0x28   :  { %v125_v53 = vsel %vm1773_vm7, 0.0, %v112_v43  ;;  %vm199_vm9 = vcmask 97280   ;;  %vm259_vm10 = vcmask 261120   ;;  %vm389_vm11 = vcmask 523264  }
  0x29   :  { %1470 = vrot.lane.b32.xlu1 %v1469_v24, %s1674_s13  ;;  %1399 = vmatpush3.bf16.msra.mxu1 %v1561_v3  ;;  %vm444_vm12 = vcmask 785408   ;;  %vm500_vm13 = vcmask 130048   ;;  %vm660_vm14 = vcmask 392192   ;;  %vm800_vm15 = vcmask 1043456  }
  0x2a   :  { %1400 = vmatprep.subr.bf16.mxu1 %v1562_v4  ;;  %vm983_vm1 = vcmask 195584  }
  0x2d   :  { %1475 = vrot.lane.b32.xlu1 %v1474_v27, %s1674_s13  ;;  %1401 = vmatpush3.bf16.msra.mxu1 %v1562_v4 }
  0x2e   :  { %1402 = vmatprep.subr.bf16.mxu1 %v1563_v5 }
  0x31   :  { %1403 = vmatpush3.bf16.msra.mxu1 %v1563_v5 }
  0x32   :  { %1404 = vmatprep.subr.bf16.mxu1 %v1564_v2 }
  0x35   :  { %1405 = vmatpush3.bf16.msra.mxu1 %v1564_v2 }
  0x92   :  { %v1461_v37 = vpop.permute.xlu0 %1460 }
  0x93   :  { %v1463_v38 = vunpack.i.h.bf16 %v1461_v37  ;;  %v1462_v39 = vunpack.i.l.bf16 %v1461_v37 }
  0x95   :  { %v181_v48 = vsel %vm180_vm6, %v123_v41, %v1462_v39  ;;  %v182_v49 = vsel %vm180_vm6, %v113_v40, %v1463_v38 }
  0x96   :  { %v1466_v44 = vpop.permute.xlu0 %1465 }
  0x97   :  { %v1468_v46 = vunpack.i.h.bf16 %v1466_v44  ;;  %v1467_v47 = vunpack.i.l.bf16 %v1466_v44 }
  0x99   :  { %v184_v56 = vsel %vm180_vm6, %v111_v52, %v1468_v46  ;;  %v183_v57 = vsel %vm180_vm6, %v125_v53, %v1467_v47 }
  0x9b   :  { %v1471_v45 = vpop.permute.xlu1 %1470 }
  0x9c   :  { %v1473_v50 = vunpack.i.h.bf16 %v1471_v45  ;;  %v1472_v51 = vunpack.i.l.bf16 %v1471_v45 }
  0x9e   :  { %v186_v54 = vsel %vm185_vm8, %v181_v48, %v1472_v51  ;;  %v187_v55 = vsel %vm185_vm8, %v182_v49, %v1473_v50 }
  0x9f   :  { %v1476_v58 = vpop.permute.xlu1 %1475  ;;  %v190_v59 = vpack.c.bf16 %v187_v55, %v186_v54  ;;  %v295_v54 = vld [vmem:[#allocation5 + $0x80] sm:$0x1] }
  0xa0   :  { %v1478_v60 = vunpack.i.h.bf16 %v1476_v58  ;;  %v1477_v61 = vunpack.i.l.bf16 %v1476_v58  ;;  %v296_v55 = vunpack.c.l.bf16 %v295_v54 }
  0xa1   :  { %1392 = vmatprep.mubr.msk.bf16.mxu0 %vm199_vm9, %v190_v59 }
  0xa2   :  { %v189_v62 = vsel %vm185_vm8, %v184_v56, %v1478_v60  ;;  %v188_v63 = vsel %vm185_vm8, %v183_v57, %v1477_v61  ;;  %v307_v57 = vsub.s32 0, %v1709_v1 }
  0xa3   :  { %v191_v0 = vpack.c.bf16 %v189_v62, %v188_v63  ;;  %v315_v62 = vsub.s32 1, %v1709_v1 }
  0xa5   :  { %1393 = vmatmul.mubr.msk.bf16.vlgmr.msra.gmra.mxu0 %vm199_vm9, %v191_v0 }
 0x165   :  { %v1394_v9 = vpop.f32.mrf.mxu0 }
 0x166   :  { %v276_v17 = vmul.f32 %v1394_v9, %v1394_v9  ;;  %v263_v22 = vsel %vm259_vm10, %v1394_v9, 0.0 }
 0x167   :  { %v244_v12 = vpop.f32.mrf.mxu0 }
 0x168   :  { %v274_v14 = vmul.f32 %v244_v12, %v244_v12  ;;  %v260_v18 = vsel %vm259_vm10, %v244_v12, 0.0  ;;  %v281_v28 = vsel %vm259_vm10, %v276_v17, 0.0 }
 0x169   :  { %v1395_v13 = vpop.f32.mrf.mxu0 }
 0x16a   :  { %v278_v23 = vsel %vm259_vm10, %v274_v14, 0.0  ;;  %v277_v24 = vmul.f32 %v1395_v13, %v1395_v13  ;;  %v265_v29 = vsel %vm259_vm10, %v1395_v13, 0.0 }
 0x16b   :  { %v247_v15 = vpop.f32.mrf.mxu0 }
 0x16c   :  { %v261_v19 = vsel %vm259_vm10, %v247_v15, 0.0  ;;  %v275_v20 = vmul.f32 %v247_v15, %v247_v15  ;;  %v283_v32 = vsel %vm259_vm10, %v277_v24, 0.0 }
 0x16d   :  { %v262_v21 = vadd.f32 %v261_v19, %v260_v18 }
 0x16e   :  { %v279_v25 = vsel %vm259_vm10, %v275_v20, 0.0 }
 0x16f   :  { %v264_v26 = vadd.f32 %v263_v22, %v262_v21  ;;  %v280_v27 = vadd.f32 %v279_v25, %v278_v23  ;;  %v1565_v21 = vld [vmem:[#allocation5 + $0x8] sm:$0xff]  }
 0x170   :  { %1406 = vmatprep.subr.bf16.mxu1 %v1565_v21 }
 0x171   :  { %v266_v30 = vadd.f32 %v265_v29, %v264_v26  ;;  %v282_v31 = vadd.f32 %v281_v28, %v280_v27  ;;  %1407 = vmatpush3.bf16.msra.mxu1 %v1565_v21 }
 0x173   :  { %v267_v33 = vrot.slane %v266_v30, 4  ;;  %v284_v34 = vadd.f32 %v283_v32, %v282_v31 }
 0x175   :  { %v268_v36 = vadd.f32 %v267_v33, %v266_v30  ;;  %v285_v37 = vrot.slane %v284_v34, 4 }
 0x177   :  { %v269_v38 = vrot.slane %v268_v36, 2  ;;  %v286_v39 = vadd.f32 %v285_v37, %v284_v34 }
 0x179   :  { %v270_v40 = vadd.f32 %v269_v38, %v268_v36  ;;  %v287_v41 = vrot.slane %v286_v39, 2 }
 0x17b   :  { %v271_v43 = vrot.slane %v270_v40, 1  ;;  %v288_v44 = vadd.f32 %v287_v41, %v286_v39 }
 0x17d   :  { %v272_v45 = vadd.f32 %v271_v43, %v270_v40  ;;  %v289_v46 = vrot.slane %v288_v44, 1 }
 0x17f   :  { %v273_v47 = vmul.f32 0.03125, %v272_v45  ;;  %v290_v48 = vadd.f32 %v289_v46, %v288_v44 }
 0x181   :  { %v291_v49 = vmul.f32 0.03125, %v290_v48  ;;  %v292_v50 = vmul.f32 %v273_v47, %v273_v47 }
 0x183   :  { %v293_v51 = vsub.f32 %v291_v49, %v292_v50 }
 0x185   :  { %v294_v52 = vmax.f32 %v293_v51, 0.0 }
 0x187   :  { %v297_v53 = vadd.f32 1e-05, %v294_v52 }
 0x189   :  { %1574 = vrsqrt.f32 %v297_v53 }
 0x196   :  { %v1575_v56 = vpop.eup %1574 }
 0x197   :  { %v299_v58 = vmul.f32 %v1575_v56, %v296_v55 }
 0x199   :  { %v300_v59 = vmul.f32 %v299_v58, %v273_v47  ;;  %v308_v60 = vrot.slane %v299_v58, %v307_v57 }
 0x19b   :  { %v302_v61 = vrot.slane %v300_v59, 7  ;;  %v310_v0 = vmul.f32 %v308_v60, %v247_v15  ;;  %v311_v4 = vmul.f32 %v1394_v9, %v308_v60  ;;  %v312_v5 = vmul.f32 %v1395_v13, %v308_v60 }
 0x19c   :  { %v309_v14 = vmul.f32 %v308_v60, %v244_v12 }
 0x19d   :  { %v304_v63 = vsub.f32 %v296_v55, %v302_v61 }
 0x19f   :  { %v316_v3 = vrot.slane %v304_v63, %v315_v62 }
 0x1a1   :  { %v318_v17 = vadd.f32 %v316_v3, %v310_v0  ;;  %v319_v18 = vadd.f32 %v316_v3, %v311_v4  ;;  %v320_v19 = vadd.f32 %v316_v3, %v312_v5  ;;  %v317_v20 = vadd.f32 %v316_v3, %v309_v14 }
 0x1a3   :  { %v322_v22 = vmul.f32 0.2, %v318_v17  ;;  %v323_v23 = vmul.f32 0.2, %v319_v18  ;;  %v324_v24 = vmul.f32 0.2, %v320_v19 }
 0x1a4   :  { %v321_v25 = vmul.f32 0.2, %v317_v20 }
 0x1a5   :  { %v326_v15 = vmax.f32 %v318_v17, %v322_v22  ;;  %v327_v26 = vmax.f32 %v319_v18, %v323_v23  ;;  %v328_v27 = vmax.f32 %v320_v19, %v324_v24  ;;  %v1566_v23 = vld [vmem:[#allocation5 + $0x48] sm:$0xff]  }
 0x1a6   :  { %v325_v28 = vmax.f32 %v317_v20, %v321_v25  ;;  %1412 = vmatprep.subr.bf16.mxu0 %v1566_v23 }
 0x1a7   :  { %v330_v9 = vrot.slane %v326_v15, 7  ;;  %v1484_v13 = vpack.i.bf16 %v328_v27, %v327_v26  ;;  %v343_v12 = vrot.slane %v327_v26, 1  ;;  %v344_v29 = vrot.slane %v328_v27, 1  ;;  %1413 = vmatpush3.bf16.msra.mxu0 %v1566_v23 }
 0x1a8   :  { %v1479_v30 = vpack.i.bf16 %v326_v15, %v325_v28  ;;  %v341_v31 = vrot.slane %v325_v28, 1  ;;  %v342_v32 = vrot.slane %v326_v15, 1  ;;  %v332_v33 = vrot.slane %v328_v27, 7 }
 0x1a9   :  { %1485 = vrot.lane.b32.xlu1 %v1484_v13, %s1678_s0  ;;  %v345_v34 = vsel %vm131_vm0, %v343_v12, %v344_v29  ;;  %v331_v36 = vrot.slane %v327_v26, 7  ;;  %v329_v37 = vrot.slane %v325_v28, 7 }
 0x1aa   :  { %1480 = vrot.lane.b32.xlu0 %v1479_v30, %s1678_s0  ;;  %v348_v38 = vsel %vm131_vm0, %v344_v29, %v341_v31  ;;  %v346_v39 = vsel %vm131_vm0, %v342_v32, %v343_v12  ;;  %v347_v40 = vsel %vm131_vm0, %v341_v31, %v342_v32 }
 0x1ab   :  { %v352_v41 = vsel %vm1734_vm3, 0.0, %v348_v38  ;;  %v350_v43 = vsel %vm1724_vm2, 0.0, %v346_v39  ;;  %v333_v44 = vsel %vm110_vm4, %v331_v36, %v332_v33  ;;  %v334_v45 = vsel %vm110_vm4, %v330_v9, %v331_v36 }
 0x1ac   :  { %v1494_v46 = vpack.i.bf16 %v352_v41, %v345_v34  ;;  %v1489_v47 = vpack.i.bf16 %v350_v43, %v347_v40  ;;  %v335_v48 = vsel %vm110_vm4, %v329_v37, %v330_v9  ;;  %v336_v49 = vsel %vm110_vm4, %v332_v33, %v329_v37 }
 0x1ad   :  { %v339_v56 = vsel %vm1773_vm7, 0.0, %v334_v45  ;;  %v337_v60 = vsel %vm1763_vm5, 0.0, %v336_v49 }
 0x1ae   :  { %1495 = vrot.lane.b32.xlu1 %v1494_v46, %s1676_s19  ;;  %1490 = vrot.lane.b32.xlu0 %v1489_v47, %s1676_s19 }
 0x21b   :  { %v1486_v50 = vpop.permute.xlu1 %1485 }
 0x21c   :  { %v1481_v51 = vpop.permute.xlu0 %1480  ;;  %v1488_v52 = vunpack.i.h.bf16 %v1486_v50  ;;  %v1487_v53 = vunpack.i.l.bf16 %v1486_v50 }
 0x21d   :  { %v1483_v54 = vunpack.i.h.bf16 %v1481_v51  ;;  %v1482_v55 = vunpack.i.l.bf16 %v1481_v51 }
 0x21e   :  { %v387_v3 = vsel %vm259_vm10, %v339_v56, %v1487_v53  ;;  %v388_v4 = vsel %vm259_vm10, %v333_v44, %v1488_v52 }
 0x21f   :  { %v385_v5 = vsel %vm259_vm10, %v337_v60, %v1482_v55  ;;  %v386_v14 = vsel %vm259_vm10, %v335_v48, %v1483_v54 }
 0x220   :  { %v1496_v58 = vpop.permute.xlu1 %1495  ;;  %v1491_v59 = vpop.permute.xlu0 %1490 }
 0x221   :  { %v1498_v61 = vunpack.i.h.bf16 %v1496_v58  ;;  %v1497_v63 = vunpack.i.l.bf16 %v1496_v58  ;;  %v1493_v0 = vunpack.i.h.bf16 %v1491_v59  ;;  %v1492_v2 = vunpack.i.l.bf16 %v1491_v59 }
 0x223   :  { %v393_v17 = vsel %vm389_vm11, %v388_v4, %v1498_v61  ;;  %v392_v18 = vsel %vm389_vm11, %v387_v3, %v1497_v63  ;;  %v390_v19 = vsel %vm389_vm11, %v385_v5, %v1492_v2  ;;  %v391_v20 = vsel %vm389_vm11, %v386_v14, %v1493_v0  ;;  %v536_v0 = vld [vmem:[#allocation5 + $0x80] sm:$0x2] }
 0x224   :  { %v395_v21 = vpack.c.bf16 %v393_v17, %v392_v18  ;;  %v394_v22 = vpack.c.bf16 %v391_v20, %v390_v19  ;;  %v537_v2 = vunpack.c.l.bf16 %v536_v0  ;;  %v548_v4 = vsub.s32 2, %v1709_v1 }
 0x225   :  { %v556_v19 = vsub.s32 3, %v1709_v1 }
 0x226   :  { %1408 = vmatprep.mubr.msk.bf16.mxu1 %vm444_vm12, %v394_v22 }
 0x227   :  { %1409 = vmatmul.mubr.msk.bf16.vlgmr.msra.gmra.mxu1 %vm444_vm12, %v395_v21 }
 0x2e7   :  { %v1410_v24 = vpop.f32.mrf.mxu1 }
 0x2e8   :  { %v517_v28 = vmul.f32 %v1410_v24, %v1410_v24  ;;  %v504_v30 = vsel %vm500_vm13, %v1410_v24, 0.0 }
 0x2e9   :  { %v485_v25 = vpop.f32.mrf.mxu1 }
 0x2ea   :  { %v515_v26 = vmul.f32 %v485_v25, %v485_v25  ;;  %v501_v9 = vsel %vm500_vm13, %v485_v25, 0.0  ;;  %v522_v37 = vsel %vm500_vm13, %v517_v28, 0.0 }
 0x2eb   :  { %v1411_v15 = vpop.f32.mrf.mxu1 }
 0x2ec   :  { %v519_v31 = vsel %vm500_vm13, %v515_v26, 0.0  ;;  %v518_v32 = vmul.f32 %v1411_v15, %v1411_v15  ;;  %v506_v38 = vsel %vm500_vm13, %v1411_v15, 0.0 }
 0x2ed   :  { %v488_v27 = vpop.f32.mrf.mxu1 }
 0x2ee   :  { %v502_v13 = vsel %vm500_vm13, %v488_v27, 0.0  ;;  %v516_v12 = vmul.f32 %v488_v27, %v488_v27  ;;  %v524_v41 = vsel %vm500_vm13, %v518_v32, 0.0 }
 0x2ef   :  { %v503_v29 = vadd.f32 %v502_v13, %v501_v9  ;;  %v1567_v9 = vld [vmem:[#allocation5 + $0x40] sm:$0xff]  }
 0x2f0   :  { %v520_v33 = vsel %vm500_vm13, %v516_v12, 0.0  ;;  %1414 = vmatprep.subr.bf16.mxu0 %v1567_v9 }
 0x2f1   :  { %v505_v34 = vadd.f32 %v504_v30, %v503_v29  ;;  %v521_v36 = vadd.f32 %v520_v33, %v519_v31  ;;  %1415 = vmatpush3.bf16.msra.mxu0 %v1567_v9 }
 0x2f3   :  { %v507_v39 = vadd.f32 %v506_v38, %v505_v34  ;;  %v523_v40 = vadd.f32 %v522_v37, %v521_v36  ;;  %v1568_v36 = vld [vmem:[#allocation5 + $0x38] sm:$0xff]  }
 0x2f4   :  { %1416 = vmatprep.subr.bf16.mxu0 %v1568_v36 }
 0x2f5   :  { %v508_v43 = vrot.slane %v507_v39, 4  ;;  %v525_v44 = vadd.f32 %v524_v41, %v523_v40  ;;  %1417 = vmatpush3.bf16.msra.mxu0 %v1568_v36 }
 0x2f7   :  { %v509_v45 = vadd.f32 %v508_v43, %v507_v39  ;;  %v526_v46 = vrot.slane %v525_v44, 4 }
 0x2f9   :  { %v510_v47 = vrot.slane %v509_v45, 2  ;;  %v527_v48 = vadd.f32 %v526_v46, %v525_v44 }
 0x2fb   :  { %v511_v49 = vadd.f32 %v510_v47, %v509_v45  ;;  %v528_v50 = vrot.slane %v527_v48, 2 }
 0x2fd   :  { %v512_v51 = vrot.slane %v511_v49, 1  ;;  %v529_v52 = vadd.f32 %v528_v50, %v527_v48 }
 0x2ff   :  { %v513_v53 = vadd.f32 %v512_v51, %v511_v49  ;;  %v530_v54 = vrot.slane %v529_v52, 1 }
 0x301   :  { %v514_v55 = vmul.f32 0.03125, %v513_v53  ;;  %v531_v56 = vadd.f32 %v530_v54, %v529_v52 }
 0x303   :  { %v532_v58 = vmul.f32 0.03125, %v531_v56  ;;  %v533_v59 = vmul.f32 %v514_v55, %v514_v55 }
 0x305   :  { %v534_v60 = vsub.f32 %v532_v58, %v533_v59 }
 0x307   :  { %v535_v61 = vmax.f32 %v534_v60, 0.0 }
 0x309   :  { %v538_v63 = vadd.f32 1e-05, %v535_v61 }
 0x30b   :  { %1576 = vrsqrt.f32 %v538_v63 }
 0x318   :  { %v1577_v3 = vpop.eup %1576 }
 0x319   :  { %v540_v5 = vmul.f32 %v1577_v3, %v537_v2 }
 0x31b   :  { %v541_v14 = vmul.f32 %v540_v5, %v514_v55  ;;  %v549_v17 = vrot.slane %v540_v5, %v548_v4 }
 0x31d   :  { %v543_v18 = vrot.slane %v541_v14, 7  ;;  %v551_v21 = vmul.f32 %v549_v17, %v488_v27  ;;  %v552_v23 = vmul.f32 %v1410_v24, %v549_v17  ;;  %v553_v26 = vmul.f32 %v1411_v15, %v549_v17 }
 0x31e   :  { %v550_v28 = vmul.f32 %v549_v17, %v485_v25 }
 0x31f   :  { %v545_v20 = vsub.f32 %v537_v2, %v543_v18 }
 0x321   :  { %v557_v22 = vrot.slane %v545_v20, %v556_v19 }
 0x323   :  { %v559_v13 = vadd.f32 %v557_v22, %v551_v21  ;;  %v560_v12 = vadd.f32 %v557_v22, %v552_v23  ;;  %v561_v29 = vadd.f32 %v557_v22, %v553_v26  ;;  %v558_v30 = vadd.f32 %v557_v22, %v550_v28 }
 0x325   :  { %v563_v31 = vmul.f32 0.2, %v559_v13  ;;  %v564_v32 = vmul.f32 0.2, %v560_v12  ;;  %v565_v33 = vmul.f32 0.2, %v561_v29 }
 0x326   :  { %v562_v34 = vmul.f32 0.2, %v558_v30 }
 0x327   :  { %v567_v37 = vmax.f32 %v559_v13, %v563_v31  ;;  %v568_v38 = vmax.f32 %v560_v12, %v564_v32  ;;  %v569_v39 = vmax.f32 %v561_v29, %v565_v33  ;;  %v787_v33 = vld [vmem:[#allocation5 + $0x50] sm:$0xf] }
 0x328   :  { %v566_v27 = vmax.f32 %v558_v30, %v562_v34  ;;  %1447 = vmatprep.subr.msk.bf16.mxu0 %vm800_vm15, %v787_v33  ;;  %v802_v34 = vsel %vm800_vm15, %v787_v33, 0 }
 0x329   :  { %v571_v24 = vrot.slane %v567_v37, 7  ;;  %v1504_v15 = vpack.i.bf16 %v569_v39, %v568_v38  ;;  %v584_v25 = vrot.slane %v568_v38, 1  ;;  %v585_v40 = vrot.slane %v569_v39, 1 }
 0x32a   :  { %v1499_v41 = vpack.i.bf16 %v567_v37, %v566_v27  ;;  %v582_v43 = vrot.slane %v566_v27, 1  ;;  %v583_v44 = vrot.slane %v567_v37, 1  ;;  %v573_v45 = vrot.slane %v569_v39, 7 }
 0x32b   :  { %1505 = vrot.lane.b32.xlu1 %v1504_v15, %s1679_s1  ;;  %v586_v46 = vsel %vm131_vm0, %v584_v25, %v585_v40  ;;  %v572_v47 = vrot.slane %v568_v38, 7  ;;  %v570_v48 = vrot.slane %v566_v27, 7 }
 0x32c   :  { %1500 = vrot.lane.b32.xlu0 %v1499_v41, %s1679_s1  ;;  %v589_v49 = vsel %vm131_vm0, %v585_v40, %v582_v43  ;;  %v587_v50 = vsel %vm131_vm0, %v583_v44, %v584_v25  ;;  %v588_v51 = vsel %vm131_vm0, %v582_v43, %v583_v44 }
 0x32d   :  { %v593_v52 = vsel %vm1734_vm3, 0.0, %v589_v49  ;;  %v591_v53 = vsel %vm1724_vm2, 0.0, %v587_v50  ;;  %v574_v54 = vsel %vm110_vm4, %v572_v47, %v573_v45  ;;  %v575_v55 = vsel %vm110_vm4, %v571_v24, %v572_v47 }
 0x32e   :  { %v1514_v56 = vpack.i.bf16 %v593_v52, %v586_v46  ;;  %v1509_v58 = vpack.i.bf16 %v591_v53, %v588_v51  ;;  %v576_v59 = vsel %vm110_vm4, %v570_v48, %v571_v24  ;;  %v577_v60 = vsel %vm110_vm4, %v573_v45, %v570_v48 }
 0x32f   :  { %v580_v5 = vsel %vm1773_vm7, 0.0, %v575_v55  ;;  %v578_v14 = vsel %vm1763_vm5, 0.0, %v577_v60 }
 0x330   :  { %1515 = vrot.lane.b32.xlu1 %v1514_v56, %s1678_s0  ;;  %1510 = vrot.lane.b32.xlu0 %v1509_v58, %s1678_s0 }
 0x39d   :  { %v1506_v61 = vpop.permute.xlu1 %1505 }
 0x39e   :  { %v1501_v63 = vpop.permute.xlu0 %1500  ;;  %v1508_v0 = vunpack.i.h.bf16 %v1506_v61  ;;  %v1507_v2 = vunpack.i.l.bf16 %v1506_v61 }
 0x39f   :  { %v1503_v3 = vunpack.i.h.bf16 %v1501_v63  ;;  %v1502_v4 = vunpack.i.l.bf16 %v1501_v63 }
 0x3a0   :  { %v628_v23 = vsel %vm500_vm13, %v580_v5, %v1507_v2  ;;  %v629_v26 = vsel %vm500_vm13, %v574_v54, %v1508_v0 }
 0x3a1   :  { %v626_v28 = vsel %vm500_vm13, %v578_v14, %v1502_v4  ;;  %v627_v9 = vsel %vm500_vm13, %v576_v59, %v1503_v3 }
 0x3a2   :  { %v1516_v17 = vpop.permute.xlu1 %1515  ;;  %v1511_v18 = vpop.permute.xlu0 %1510 }
 0x3a3   :  { %v1518_v19 = vunpack.i.h.bf16 %v1516_v17  ;;  %v1517_v20 = vunpack.i.l.bf16 %v1516_v17  ;;  %v1513_v21 = vunpack.i.h.bf16 %v1511_v18  ;;  %v1512_v22 = vunpack.i.l.bf16 %v1511_v18 }
 0x3a5   :  { %v633_v13 = vsel %vm259_vm10, %v629_v26, %v1518_v19  ;;  %v632_v12 = vsel %vm259_vm10, %v628_v23, %v1517_v20  ;;  %v630_v29 = vsel %vm259_vm10, %v626_v28, %v1512_v22  ;;  %v631_v30 = vsel %vm259_vm10, %v627_v9, %v1513_v21  ;;  %v751_v22 = vld [vmem:[#allocation5 + $0x80] sm:$0x4] }
 0x3a6   :  { %v635_v31 = vpack.c.bf16 %v633_v13, %v632_v12  ;;  %v634_v32 = vpack.c.bf16 %v631_v30, %v630_v29  ;;  %v752_v23 = vunpack.c.l.bf16 %v751_v22  ;;  %v763_v28 = vsub.s32 4, %v1709_v1 }
 0x3a7   :  { %v771_v30 = vsub.s32 5, %v1709_v1 }
 0x3a8   :  { %1418 = vmatprep.mubr.msk.bf16.mxu0 %vm660_vm14, %v634_v32 }
 0x3a9   :  { %1419 = vmatmul.mubr.msk.bf16.vlgmr.msra.gmra.mxu0 %vm660_vm14, %v635_v31 }
 0x3aa   :  { %1423 = vmatpush3.bf16.msra.mxu0 %v802_v34 }
 0x469   :  { %v1420_v36 = vpop.f32.mrf.mxu0 }
 0x46a   :  { %v732_v24 = vmul.f32 %v1420_v36, %v1420_v36  ;;  %v719_v43 = vsel %vm185_vm8, %v1420_v36, 0.0 }
 0x46b   :  { %v701_v37 = vpop.f32.mrf.mxu0 }
 0x46c   :  { %v730_v39 = vmul.f32 %v701_v37, %v701_v37  ;;  %v716_v15 = vsel %vm185_vm8, %v701_v37, 0.0  ;;  %v737_v49 = vsel %vm185_vm8, %v732_v24, 0.0 }
 0x46d   :  { %v1421_v38 = vpop.f32.mrf.mxu0 }
 0x46e   :  { %v734_v44 = vsel %vm185_vm8, %v730_v39, 0.0  ;;  %v733_v45 = vmul.f32 %v1421_v38, %v1421_v38  ;;  %v721_v50 = vsel %vm185_vm8, %v1421_v38, 0.0 }
 0x46f   :  { %v704_v27 = vpop.f32.mrf.mxu0 }
 0x470   :  { %v717_v25 = vsel %vm185_vm8, %v704_v27, 0.0  ;;  %v731_v40 = vmul.f32 %v704_v27, %v704_v27  ;;  %v739_v53 = vsel %vm185_vm8, %v733_v45, 0.0 }
 0x471   :  { %v718_v41 = vadd.f32 %v717_v25, %v716_v15 }
 0x472   :  { %v735_v46 = vsel %vm185_vm8, %v731_v40, 0.0 }
 0x473   :  { %v720_v47 = vadd.f32 %v719_v43, %v718_v41  ;;  %v736_v48 = vadd.f32 %v735_v46, %v734_v44 }
 0x475   :  { %v722_v51 = vadd.f32 %v721_v50, %v720_v47  ;;  %v738_v52 = vadd.f32 %v737_v49, %v736_v48 }
 0x477   :  { %v723_v54 = vrot.slane %v722_v51, 4  ;;  %v740_v55 = vadd.f32 %v739_v53, %v738_v52 }
 0x479   :  { %v724_v56 = vadd.f32 %v723_v54, %v722_v51  ;;  %v741_v58 = vrot.slane %v740_v55, 4 }
 0x47b   :  { %v725_v59 = vrot.slane %v724_v56, 2  ;;  %v742_v60 = vadd.f32 %v741_v58, %v740_v55 }
 0x47d   :  { %v726_v61 = vadd.f32 %v725_v59, %v724_v56  ;;  %v743_v63 = vrot.slane %v742_v60, 2 }
 0x47f   :  { %v727_v0 = vrot.slane %v726_v61, 1  ;;  %v744_v2 = vadd.f32 %v743_v63, %v742_v60 }
 0x481   :  { %v728_v3 = vadd.f32 %v727_v0, %v726_v61  ;;  %v745_v4 = vrot.slane %v744_v2, 1 }
 0x483   :  { %v729_v5 = vmul.f32 0.03125, %v728_v3  ;;  %v746_v14 = vadd.f32 %v745_v4, %v744_v2 }
 0x485   :  { %v747_v17 = vmul.f32 0.03125, %v746_v14  ;;  %v748_v18 = vmul.f32 %v729_v5, %v729_v5 }
 0x487   :  { %v749_v19 = vsub.f32 %v747_v17, %v748_v18 }
 0x489   :  { %v750_v20 = vmax.f32 %v749_v19, 0.0 }
 0x48b   :  { %v753_v21 = vadd.f32 1e-05, %v750_v20 }
 0x48d   :  { %1578 = vrsqrt.f32 %v753_v21 }
 0x49a   :  { %v1579_v26 = vpop.eup %1578 }
 0x49b   :  { %v755_v9 = vmul.f32 %v1579_v26, %v752_v23 }
 0x49d   :  { %v756_v13 = vmul.f32 %v755_v9, %v729_v5  ;;  %v764_v12 = vrot.slane %v755_v9, %v763_v28 }
 0x49f   :  { %v758_v29 = vrot.slane %v756_v13, 7  ;;  %v766_v32 = vmul.f32 %v764_v12, %v704_v27  ;;  %v765_v34 = vmul.f32 %v764_v12, %v701_v37  ;;  %v767_v39 = vmul.f32 %v1420_v36, %v764_v12  ;;  %v1905_v36 = vld [vmem:[#allocation5 + $0x80] sm:$0x8] }
 0x4a0   :  { %v768_v24 = vmul.f32 %v1421_v38, %v764_v12  ;;  %v789_v37 = vunpack.c.l.bf16 %v1905_v36  ;;  %v792_v38 = vsub.s32 6, %v1709_v1 }
 0x4a1   :  { %v760_v31 = vsub.f32 %v752_v23, %v758_v29 }
 0x4a2   :  { %v793_v27 = vrot.slane %v789_v37, %v792_v38 }
 0x4a3   :  { %v772_v33 = vrot.slane %v760_v31, %v771_v30 }
 0x4a5   :  { %v774_v15 = vadd.f32 %v772_v33, %v766_v32  ;;  %v773_v25 = vadd.f32 %v772_v33, %v765_v34  ;;  %v775_v40 = vadd.f32 %v772_v33, %v767_v39  ;;  %v776_v41 = vadd.f32 %v772_v33, %v768_v24  ;;  %v1569_v33 = vld [vmem:[#allocation5 + $0x60] ss:$0 sps:$4 sm:$0xff]  }
 0x4a6   :  { %1448 = vmatprep.subr.msk.bf16.mxu0 %vm800_vm15, %v1569_v33 }
 0x4a7   :  { %v778_v43 = vmul.f32 0.2, %v774_v15  ;;  %v777_v44 = vmul.f32 0.2, %v773_v25  ;;  %v779_v45 = vmul.f32 0.2, %v775_v40 }
 0x4a8   :  { %v780_v46 = vmul.f32 0.2, %v776_v41 }
 0x4a9   :  { %v782_v47 = vmax.f32 %v774_v15, %v778_v43  ;;  %v781_v48 = vmax.f32 %v773_v25, %v777_v44  ;;  %v783_v49 = vmax.f32 %v775_v40, %v779_v45  ;;  %v1570_v43 = vld [vmem:[#allocation5 + $0x58] sm:$0xff]  }
 0x4aa   :  { %v784_v50 = vmax.f32 %v776_v41, %v780_v46 }
 0x4ab   :  { %v785_v51 = vpack.c.bf16 %v782_v47, %v781_v48 }
 0x4ac   :  { %v786_v52 = vpack.c.bf16 %v784_v50, %v783_v49 }
 0x4ad   :  { %1424 = vmatprep.mubr.msk.bf16.mxu0 %vm185_vm8, %v785_v51 }
 0x4ae   :  { %1425 = vmatmul.mubr.msk.bf16.vlgmr.msra.gmra.mxu0 %vm185_vm8, %v786_v52 }
 0x56e   :  { %v1426_v53 = vpop.f32.mrf.mxu0 }
 0x56f   :  { %v1911_v54 = vadd.f32 %v1426_v53, %v793_v27 }
 0x570   :  { %v838_v55 = vpop.f32.mrf.mxu0 }
 0x571   :  { %v855_v56 = vmul.f32 0.5, %v1911_v54  ;;  %v1914_v60 = vadd.f32 %v838_v55, %v793_v27 }
 0x572   :  { %v1427_v58 = vpop.f32.mrf.mxu0 }
 0x573   :  { %v861_v59 = vmul.f32 1.442695, %v855_v56  ;;  %v1916_v61 = vadd.f32 %v1427_v58, %v793_v27  ;;  %v853_v3 = vmul.f32 0.5, %v1914_v60 }
 0x574   :  { %v841_v63 = vpop.f32.mrf.mxu0 }
 0x575   :  { %1580 = vpow2.f32 %v861_v59  ;;  %v856_v0 = vmul.f32 0.5, %v1916_v61  ;;  %v1919_v2 = vadd.f32 %v841_v63, %v793_v27  ;;  %v857_v17 = vmul.f32 1.442695, %v853_v3 }
 0x577   :  { %v863_v4 = vmul.f32 1.442695, %v856_v0  ;;  %v854_v5 = vmul.f32 0.5, %v1919_v2 }
 0x579   :  { %1582 = vpow2.f32 %v863_v4  ;;  %v859_v14 = vmul.f32 1.442695, %v854_v5 }
 0x57b   :  { %1584 = vpow2.f32 %v859_v14 }
 0x57c   :  { %1586 = vpow2.f32 %v857_v17 }
 0x582   :  { %v1581_v18 = vpop.eup %1580 }
 0x583   :  { %873 = vrot.lane.b32.xlu1 %v1581_v18, %s1680_s23 }
 0x586   :  { %v1583_v19 = vpop.eup %1582 }
 0x587   :  { %875 = vrot.lane.b32.xlu1 %v1583_v19, %s1680_s23 }
 0x588   :  { %v1585_v20 = vpop.eup %1584 }
 0x589   :  { %871 = vrot.lane.b32.xlu0 %v1585_v20, %s1680_s23  ;;  %v1587_v21 = vpop.eup %1586 }
 0x58d   :  { %869 = vrot.lane.b32.xlu0 %v1587_v21, %s1680_s23 }
 0x5f5   :  { %v874_v22 = vpop.permute.xlu1 %873 }
 0x5f6   :  { %v883_v23 = vmul.f32 %v874_v22, %v1717_v8 }
 0x5f8   :  { %893 = vrot.lane.b32.xlu1 %v883_v23, %s1680_s23 }
 0x5f9   :  { %v876_v26 = vpop.permute.xlu1 %875 }
 0x5fa   :  { %v884_v28 = vmul.f32 %v876_v26, %v1722_v10  ;;  %v991_v10 = vsel %vm800_vm15, %v1569_v33, 0 }
 0x5fb   :  { %v872_v9 = vpop.permute.xlu0 %871  ;;  %1429 = vmatpush3.bf16.msra.mxu0 %v991_v10  ;;  %v1571_v10 = vld [vmem:[#allocation5 + $0x78] sm:$0xff]  }
 0x5fc   :  { %v882_v13 = vmul.f32 %v872_v9, %v1715_v7  ;;  %895 = vrot.lane.b32.xlu1 %v884_v28, %s1680_s23  ;;  %1430 = vmatprep.subr.bf16.mxu0 %v1570_v43 }
 0x5fd   :  { %1436 = vmatprep.subr.bf16.mxu1 %v1571_v10 }
 0x5fe   :  { %891 = vrot.lane.b32.xlu0 %v882_v13, %s1680_s23  ;;  %1437 = vmatpush3.bf16.msra.mxu1 %v1571_v10 }
 0x5ff   :  { %v870_v12 = vpop.permute.xlu0 %869  ;;  %1431 = vmatpush3.bf16.msra.mxu0 %v1570_v43 }
 0x600   :  { %v881_v29 = vmul.f32 %v870_v12, %v1713_v6 }
 0x602   :  { %889 = vrot.lane.b32.xlu0 %v881_v29, %s1680_s23 }
 0x66a   :  { %v894_v30 = vpop.permute.xlu1 %893 }
 0x66b   :  { %v903_v31 = vadd.f32 %v894_v30, %v1911_v54 }
 0x66d   :  { %v907_v39 = vrot.slane %v903_v31, 7  ;;  %v919_v6 = vrot.slane %v903_v31, 1 }
 0x66e   :  { %v896_v32 = vpop.permute.xlu1 %895 }
 0x66f   :  { %v904_v8 = vadd.f32 %v896_v32, %v1916_v61 }
 0x670   :  { %v892_v34 = vpop.permute.xlu0 %891 }
 0x671   :  { %v908_v7 = vrot.slane %v904_v8, 7  ;;  %v902_v24 = vadd.f32 %v892_v34, %v1919_v2  ;;  %v1519_v15 = vpack.i.bf16 %v904_v8, %v903_v31  ;;  %v920_v48 = vrot.slane %v904_v8, 1 }
 0x673   :  { %v906_v25 = vrot.slane %v902_v24, 7  ;;  %v918_v40 = vrot.slane %v902_v24, 1  ;;  %1520 = vrot.lane.b32.xlu1 %v1519_v15, %s1674_s13  ;;  %v909_v41 = vsel %vm110_vm4, %v907_v39, %v908_v7  ;;  %v921_v56 = vsel %vm131_vm0, %v919_v6, %v920_v48 }
 0x674   :  { %v890_v44 = vpop.permute.xlu0 %889 }
 0x675   :  { %v901_v45 = vadd.f32 %v890_v44, %v1914_v60  ;;  %v922_v46 = vsel %vm131_vm0, %v918_v40, %v919_v6  ;;  %v910_v47 = vsel %vm110_vm4, %v906_v25, %v907_v39 }
 0x676   :  { %v926_v52 = vsel %vm1724_vm2, 0.0, %v922_v46  ;;  %v915_v18 = vsel %vm1773_vm7, 0.0, %v910_v47 }
 0x677   :  { %v905_v49 = vrot.slane %v901_v45, 7  ;;  %v917_v50 = vrot.slane %v901_v45, 1  ;;  %v1524_v51 = vpack.i.bf16 %v902_v24, %v901_v45 }
 0x679   :  { %1525 = vrot.lane.b32.xlu0 %v1524_v51, %s1674_s13  ;;  %v924_v38 = vsel %vm131_vm0, %v920_v48, %v917_v50  ;;  %v923_v27 = vsel %vm131_vm0, %v917_v50, %v918_v40  ;;  %v911_v53 = vsel %vm110_vm4, %v905_v49, %v906_v25  ;;  %v912_v55 = vsel %vm110_vm4, %v908_v7, %v905_v49 }
 0x67a   :  { %v928_v58 = vsel %vm1734_vm3, 0.0, %v924_v38  ;;  %v1529_v59 = vpack.i.bf16 %v926_v52, %v923_v27  ;;  %v913_v19 = vsel %vm1763_vm5, 0.0, %v912_v55 }
 0x67b   :  { %v1534_v63 = vpack.i.bf16 %v928_v58, %v921_v56 }
 0x67d   :  { %1535 = vrot.lane.b32.xlu1 %v1534_v63, %s1679_s1  ;;  %1530 = vrot.lane.b32.xlu0 %v1529_v59, %s1679_s1 }
 0x6e5   :  { %v1521_v0 = vpop.permute.xlu1 %1520 }
 0x6e6   :  { %v1523_v4 = vunpack.i.h.bf16 %v1521_v0  ;;  %v1522_v5 = vunpack.i.l.bf16 %v1521_v0 }
 0x6e8   :  { %v963_v9 = vsel %vm185_vm8, %v915_v18, %v1522_v5  ;;  %v964_v13 = vsel %vm185_vm8, %v909_v41, %v1523_v4 }
 0x6eb   :  { %v1526_v3 = vpop.permute.xlu0 %1525 }
 0x6ec   :  { %v1528_v14 = vunpack.i.h.bf16 %v1526_v3  ;;  %v1527_v17 = vunpack.i.l.bf16 %v1526_v3 }
 0x6ee   :  { %v961_v12 = vsel %vm185_vm8, %v913_v19, %v1527_v17  ;;  %v962_v29 = vsel %vm185_vm8, %v911_v53, %v1528_v14 }
 0x6ef   :  { %v1536_v20 = vpop.permute.xlu1 %1535  ;;  %v1531_v21 = vpop.permute.xlu0 %1530 }
 0x6f0   :  { %v1538_v22 = vunpack.i.h.bf16 %v1536_v20  ;;  %v1537_v23 = vunpack.i.l.bf16 %v1536_v20  ;;  %v1533_v26 = vunpack.i.h.bf16 %v1531_v21  ;;  %v1532_v28 = vunpack.i.l.bf16 %v1531_v21 }
 0x6f2   :  { %v968_v30 = vsel %vm500_vm13, %v964_v13, %v1538_v22  ;;  %v967_v31 = vsel %vm500_vm13, %v963_v9, %v1537_v23  ;;  %v965_v32 = vsel %vm500_vm13, %v961_v12, %v1532_v28  ;;  %v966_v33 = vsel %vm500_vm13, %v962_v29, %v1533_v26  ;;  %v1979_v13 = vld [vmem:[#allocation5 + $0x84] sm:$0x1] }
 0x6f3   :  { %v970_v8 = vpack.c.bf16 %v968_v30, %v967_v31  ;;  %v969_v34 = vpack.c.bf16 %v966_v33, %v965_v32  ;;  %v1089_v12 = vsub.s32 7, %v1709_v1  ;;  %v1081_v30 = vunpack.c.l.bf16 %v1979_v13 }
 0x6f5   :  { %1432 = vmatprep.mubr.msk.bf16.mxu0 %vm983_vm1, %v969_v34 }
 0x6f6   :  { %1433 = vmatmul.mubr.msk.bf16.vlgmr.msra.gmra.mxu0 %vm983_vm1, %v970_v8 }
 0x7b6   :  { %v1434_v39 = vpop.f32.mrf.mxu0 }
 0x7b7   :  { %v1058_v25 = vmul.f32 %v1434_v39, %v1434_v39  ;;  %v1045_v45 = vsel %vm500_vm13, %v1434_v39, 0.0 }
 0x7b8   :  { %v1027_v7 = vpop.f32.mrf.mxu0 }
 0x7b9   :  { %v1056_v15 = vmul.f32 %v1027_v7, %v1027_v7  ;;  %v1042_v40 = vsel %vm500_vm13, %v1027_v7, 0.0  ;;  %v1063_v51 = vsel %vm500_vm13, %v1058_v25, 0.0 }
 0x7ba   :  { %v1435_v24 = vpop.f32.mrf.mxu0 }
 0x7bb   :  { %v1060_v46 = vsel %vm500_vm13, %v1056_v15, 0.0  ;;  %v1059_v47 = vmul.f32 %v1435_v24, %v1435_v24  ;;  %v1047_v52 = vsel %vm500_vm13, %v1435_v24, 0.0 }
 0x7bc   :  { %v1030_v6 = vpop.f32.mrf.mxu0 }
 0x7bd   :  { %v1043_v41 = vsel %vm500_vm13, %v1030_v6, 0.0  ;;  %v1057_v43 = vmul.f32 %v1030_v6, %v1030_v6  ;;  %v1065_v53 = vsel %vm500_vm13, %v1059_v47, 0.0 }
 0x7be   :  { %v1044_v44 = vadd.f32 %v1043_v41, %v1042_v40  ;;  %v1572_v41 = vld [vmem:[#allocation5 + $0x70] sm:$0xff]  }
 0x7bf   :  { %v1061_v48 = vsel %vm500_vm13, %v1057_v43, 0.0  ;;  %1438 = vmatprep.subr.bf16.mxu1 %v1572_v41 }
 0x7c0   :  { %v1046_v49 = vadd.f32 %v1045_v45, %v1044_v44  ;;  %v1062_v50 = vadd.f32 %v1061_v48, %v1060_v46  ;;  %1439 = vmatpush3.bf16.msra.mxu1 %v1572_v41 }
 0x7c2   :  { %v1048_v38 = vadd.f32 %v1047_v52, %v1046_v49  ;;  %v1064_v27 = vadd.f32 %v1063_v51, %v1062_v50  ;;  %v1573_v49 = vld [vmem:[#allocation5 + $0x68] sm:$0xff]  }
 0x7c3   :  { %1440 = vmatprep.subr.bf16.mxu1 %v1573_v49 }
 0x7c4   :  { %v1049_v55 = vrot.slane %v1048_v38, 4  ;;  %v1066_v56 = vadd.f32 %v1065_v53, %v1064_v27  ;;  %1441 = vmatpush3.bf16.msra.mxu1 %v1573_v49 }
 0x7c6   :  { %v1050_v58 = vadd.f32 %v1049_v55, %v1048_v38  ;;  %v1067_v59 = vrot.slane %v1066_v56, 4 }
 0x7c8   :  { %v1051_v63 = vrot.slane %v1050_v58, 2  ;;  %v1068_v0 = vadd.f32 %v1067_v59, %v1066_v56 }
 0x7ca   :  { %v1052_v3 = vadd.f32 %v1051_v63, %v1050_v58  ;;  %v1069_v4 = vrot.slane %v1068_v0, 2 }
 0x7cc   :  { %v1053_v5 = vrot.slane %v1052_v3, 1  ;;  %v1070_v14 = vadd.f32 %v1069_v4, %v1068_v0 }
 0x7ce   :  { %v1054_v17 = vadd.f32 %v1053_v5, %v1052_v3  ;;  %v1071_v18 = vrot.slane %v1070_v14, 1 }
 0x7d0   :  { %v1055_v19 = vmul.f32 0.03125, %v1054_v17  ;;  %v1072_v20 = vadd.f32 %v1071_v18, %v1070_v14 }
 0x7d2   :  { %v1073_v21 = vmul.f32 0.03125, %v1072_v20  ;;  %v1074_v22 = vmul.f32 %v1055_v19, %v1055_v19 }
 0x7d4   :  { %v1075_v23 = vsub.f32 %v1073_v21, %v1074_v22 }
 0x7d6   :  { %v1076_v26 = vmax.f32 %v1075_v23, 0.0 }
 0x7d8   :  { %v1077_v28 = vadd.f32 1e-05, %v1076_v26 }
 0x7da   :  { %1588 = vrsqrt.f32 %v1077_v28 }
 0x7e7   :  { %v1589_v9 = vpop.eup %1588 }
 0x7e8   :  { %v1079_v29 = vmul.f32 %v1589_v9, %v789_v37 }
 0x7ea   :  { %v1082_v31 = vmul.f32 %v1079_v29, %v1055_v19  ;;  %v1090_v32 = vrot.slane %v1079_v29, %v1089_v12 }
 0x7ec   :  { %v1084_v33 = vrot.slane %v1082_v31, 7  ;;  %v1092_v34 = vmul.f32 %v1090_v32, %v1030_v6  ;;  %v1093_v15 = vmul.f32 %v1434_v39, %v1090_v32  ;;  %v1094_v25 = vmul.f32 %v1435_v24, %v1090_v32 }
 0x7ed   :  { %v1091_v40 = vmul.f32 %v1090_v32, %v1027_v7 }
 0x7ee   :  { %v1086_v8 = vsub.f32 %v1081_v30, %v1084_v33 }
 0x7f0   :  { %v1098_v10 = vrot.slane %v1086_v8, %v307_v57 }
 0x7f2   :  { %v1100_v43 = vadd.f32 %v1098_v10, %v1092_v34  ;;  %v1101_v44 = vadd.f32 %v1098_v10, %v1093_v15  ;;  %v1102_v36 = vadd.f32 %v1098_v10, %v1094_v25  ;;  %v1099_v37 = vadd.f32 %v1098_v10, %v1091_v40 }
 0x7f4   :  { %v1104_v45 = vmul.f32 0.2, %v1100_v43  ;;  %v1105_v46 = vmul.f32 0.2, %v1101_v44  ;;  %v1106_v47 = vmul.f32 0.2, %v1102_v36 }
 0x7f5   :  { %v1103_v48 = vmul.f32 0.2, %v1099_v37 }
 0x7f6   :  { %v1108_v50 = vmax.f32 %v1100_v43, %v1104_v45  ;;  %v1109_v6 = vmax.f32 %v1101_v44, %v1105_v46  ;;  %v1110_v51 = vmax.f32 %v1102_v36, %v1106_v47 }
 0x7f7   :  { %v1107_v52 = vmax.f32 %v1099_v37, %v1103_v48  ;;  %v1186_v37 = vrot.slane %v1081_v30, %v315_v62 }
 0x7f8   :  { %v1112_v57 = vrot.slane %v1108_v50, 7  ;;  %v1544_v39 = vpack.i.bf16 %v1110_v51, %v1109_v6  ;;  %v1125_v7 = vrot.slane %v1109_v6, 1  ;;  %v1126_v24 = vrot.slane %v1110_v51, 1 }
 0x7f9   :  { %v1539_v38 = vpack.i.bf16 %v1108_v50, %v1107_v52  ;;  %v1123_v27 = vrot.slane %v1107_v52, 1  ;;  %v1124_v53 = vrot.slane %v1108_v50, 1  ;;  %v1114_v55 = vrot.slane %v1110_v51, 7 }
 0x7fa   :  { %1545 = vrot.lane.b32.xlu1 %v1544_v39, %s1679_s1  ;;  %v1127_v56 = vsel %vm131_vm0, %v1125_v7, %v1126_v24  ;;  %v1113_v58 = vrot.slane %v1109_v6, 7  ;;  %v1111_v59 = vrot.slane %v1107_v52, 7 }
 0x7fb   :  { %1540 = vrot.lane.b32.xlu0 %v1539_v38, %s1679_s1  ;;  %v1130_v63 = vsel %vm131_vm0, %v1126_v24, %v1123_v27  ;;  %v1128_v0 = vsel %vm131_vm0, %v1124_v53, %v1125_v7  ;;  %v1129_v3 = vsel %vm131_vm0, %v1123_v27, %v1124_v53  ;;  %vm1304_vm0 = vcmask 162816  }
 0x7fc   :  { %v1134_v4 = vsel %vm1734_vm3, 0.0, %v1130_v63  ;;  %v1132_v5 = vsel %vm1724_vm2, 0.0, %v1128_v0  ;;  %v1115_v14 = vsel %vm110_vm4, %v1113_v58, %v1114_v55  ;;  %v1116_v17 = vsel %vm110_vm4, %v1112_v57, %v1113_v58 }
 0x7fd   :  { %v1554_v18 = vpack.i.bf16 %v1134_v4, %v1127_v56  ;;  %v1549_v19 = vpack.i.bf16 %v1132_v5, %v1129_v3  ;;  %v1117_v20 = vsel %vm110_vm4, %v1111_v59, %v1112_v57  ;;  %v1118_v21 = vsel %vm110_vm4, %v1114_v55, %v1111_v59 }
 0x7fe   :  { %v1121_v9 = vsel %vm1773_vm7, 0.0, %v1116_v17  ;;  %v1119_v12 = vsel %vm1763_vm5, 0.0, %v1118_v21 }
 0x7ff   :  { %1555 = vrot.lane.b32.xlu1 %v1554_v18, %s1678_s0  ;;  %1550 = vrot.lane.b32.xlu0 %v1549_v19, %s1678_s0 }
 0x86c   :  { %v1546_v11 = vpop.permute.xlu1 %1545 }
 0x86d   :  { %v1541_v16 = vpop.permute.xlu0 %1540  ;;  %v1548_v22 = vunpack.i.h.bf16 %v1546_v11  ;;  %v1547_v23 = vunpack.i.l.bf16 %v1546_v11 }
 0x86e   :  { %v1543_v26 = vunpack.i.h.bf16 %v1541_v16  ;;  %v1542_v28 = vunpack.i.l.bf16 %v1541_v16 }
 0x86f   :  { %v1169_v10 = vsel %vm500_vm13, %v1121_v9, %v1547_v23  ;;  %v1170_v15 = vsel %vm500_vm13, %v1115_v14, %v1548_v22 }
 0x870   :  { %v1167_v25 = vsel %vm500_vm13, %v1119_v12, %v1542_v28  ;;  %v1168_v40 = vsel %vm500_vm13, %v1117_v20, %v1543_v26 }
 0x871   :  { %v1556_v29 = vpop.permute.xlu1 %1555  ;;  %v1551_v31 = vpop.permute.xlu0 %1550 }
 0x872   :  { %v1558_v32 = vunpack.i.h.bf16 %v1556_v29  ;;  %v1557_v33 = vunpack.i.l.bf16 %v1556_v29  ;;  %v1553_v8 = vunpack.i.h.bf16 %v1551_v31  ;;  %v1552_v34 = vunpack.i.l.bf16 %v1551_v31 }
 0x874   :  { %v1174_v42 = vsel %vm259_vm10, %v1170_v15, %v1558_v32  ;;  %v1173_v41 = vsel %vm259_vm10, %v1169_v10, %v1557_v33  ;;  %v1171_v35 = vsel %vm259_vm10, %v1167_v25, %v1552_v34  ;;  %v1172_v43 = vsel %vm259_vm10, %v1168_v40, %v1553_v8 }
 0x875   :  { %v1176_v44 = vpack.c.bf16 %v1174_v42, %v1173_v41  ;;  %v1175_v36 = vpack.c.bf16 %v1172_v43, %v1171_v35 }
 0x877   :  { %1442 = vmatprep.mubr.msk.bf16.mxu1 %vm660_vm14, %v1175_v36 }
 0x878   :  { %1443 = vmatmul.mubr.msk.bf16.vlgmr.msra.gmra.mxu1 %vm660_vm14, %v1176_v44 }
 0x938   :  { %v1444_v45 = vpop.f32.mrf.mxu1 }
 0x939   :  { %v1254_v46 = vadd.f32 %v1444_v45, %v1186_v37 }
 0x93a   :  { %v1245_v47 = vpop.f32.mrf.mxu1 }
 0x93b   :  { %v1360_v48 = vmul.f32 -1.442695, %v1254_v46  ;;  %v1246_v49 = vadd.f32 %v1245_v47, %v1186_v37 }
 0x93c   :  { %v1445_v50 = vpop.f32.mrf.mxu1 }
 0x93d   :  { %v1358_v6 = vmul.f32 -1.442695, %v1246_v49  ;;  %v1257_v51 = vadd.f32 %v1445_v50, %v1186_v37  ;;  %1590 = vpow2.f32 %v1360_v48 }
 0x93e   :  { %v1248_v52 = vpop.f32.mrf.mxu1 }
 0x93f   :  { %1592 = vpow2.f32 %v1358_v6  ;;  %v1361_v57 = vmul.f32 -1.442695, %v1257_v51  ;;  %v1249_v39 = vadd.f32 %v1248_v52, %v1186_v37 }
 0x941   :  { %v1359_v7 = vmul.f32 -1.442695, %v1249_v39  ;;  %1594 = vpow2.f32 %v1361_v57 }
 0x943   :  { %1596 = vpow2.f32 %v1359_v7 }
 0x94a   :  { %v1591_v1 = vpop.eup %1590 }
 0x94b   :  { %v1274_v62 = vadd.f32 1.0, %v1591_v1 }
 0x94c   :  { %v1593_v24 = vpop.eup %1592 }
 0x94d   :  { %v1272_v13 = vadd.f32 1.0, %v1593_v24 }
 0x94e   :  { %v1595_v30 = vpop.eup %1594 }
 0x94f   :  { %1598 = vrcp.f32 %v1272_v13  ;;  %v1275_v53 = vadd.f32 1.0, %v1595_v30 }
 0x950   :  { %v1597_v38 = vpop.eup %1596  ;;  %1600 = vrcp.f32 %v1274_v62 }
 0x951   :  { %v1273_v27 = vadd.f32 1.0, %v1597_v38 }
 0x953   :  { %1602 = vrcp.f32 %v1273_v27 }
 0x954   :  { %1604 = vrcp.f32 %v1275_v53 }
 0x95c   :  { %v1599_v55 = vpop.eup %1598 }
 0x95d   :  { %1288 = vrot.lane.b32.xlu0 %v1599_v55, %s1679_s1  ;;  %v1601_v56 = vpop.eup %1600 }
 0x960   :  { %v1603_v58 = vpop.eup %1602 }
 0x961   :  { %1290 = vrot.lane.b32.xlu1 %v1603_v58, %s1679_s1  ;;  %1292 = vrot.lane.b32.xlu0 %v1601_v56, %s1679_s1  ;;  %v1605_v59 = vpop.eup %1604 }
 0x965   :  { %1294 = vrot.lane.b32.xlu1 %v1605_v59, %s1679_s1 }
 0x9cf   :  { %v1289_v63 = vpop.permute.xlu0 %1288 }
 0x9d0   :  { %v1300_v0 = vsel %vm500_vm13, %v1914_v60, %v1289_v63 }
 0x9d1   :  { %v1305_v3 = vsel %vm1304_vm0, %v1300_v0, 0.0 }
 0x9d2   :  { %1309 = vst [vmem:[#allocation7] sm:$0xff] %v1305_v3 }
 0x9d3   :  { %v1291_v4 = vpop.permute.xlu1 %1290  ;;  %v1293_v5 = vpop.permute.xlu0 %1292 }
 0x9d4   :  { %v1301_v14 = vsel %vm500_vm13, %v1919_v2, %v1291_v4  ;;  %v1302_v17 = vsel %vm500_vm13, %v1911_v54, %v1293_v5 }
 0x9d5   :  { %v1306_v18 = vsel %vm1304_vm0, %v1301_v14, 0.0  ;;  %v1307_v19 = vsel %vm1304_vm0, %v1302_v17, 0.0 }
 0x9d6   :  { %1310 = vst [vmem:[#allocation7 + $0x8] sm:$0xff] %v1306_v18  ;;  %1311 = vst [vmem:[#allocation7 + $0x10] sm:$0xff] %v1307_v19 }
 0x9d7   :  { %v1295_v60 = vpop.permute.xlu1 %1294 }
 0x9d8   :  { %v1303_v20 = vsel %vm500_vm13, %v1916_v61, %v1295_v60 }
 0x9d9   :  { %v1308_v21 = vsel %vm1304_vm0, %v1303_v20, 0.0 }
 0x9da   :  { %1312 = vst [vmem:[#allocation7 + $0x18] sm:$0xff] %v1308_v21 }
 0x9db   :  { %1657 = shalt.err (!%p1654_p0)
}
 0x9dc   :  { %1324 = dma.vmem_to_hbm [thread:$0]  %s1319_s25, 512, %s2055_s2, [#allocation4], %s1673_s12, %s1673_s12, %s1674_s13  }
 0x9dd   :  { %1670 = dma.done.wait [#allocation4], 512  }
 0x9de   :  { %1671 = vsyncadd [#allocation4], 4294966784 }
 0x9df   :  { %1328 = vsyncpa [#allocation3], 1 }
 0x9e0   :  { %1329 = vsyncpa [#allocation6], 1 }
 0x9e1   :  { %1330 = vsyncpa [#allocation4], 1 }

</bundles_post_ra>
